<compile_context>
chip_gen: v5e
topology: v5e:2x2
jax: 0.10.0
libtpu: 0.0.40
codegen_flags: <defaults>
</compile_context>

<pallas_src>
from functools import partial

import jax
import jax.numpy as jnp
from jax.experimental import pallas as pl
from jax.experimental.pallas import tpu as pltpu

EPS = 1e-5


def _round_up(n, m=128):
    return ((n + m - 1) // m) * m


def _layer_norm(x, gamma, beta, inv_n):
    """LayerNorm over the last dim. Padded lanes of x / gamma / beta are exactly
    zero, so unmasked sums equal the real-feature sums (divide by the *real*
    count via inv_n) and padded output lanes stay zero for downstream matmuls."""
    mu = jnp.sum(x, axis=-1, keepdims=True) * inv_n
    var = jnp.sum(x * x, axis=-1, keepdims=True) * inv_n - mu * mu
    return (x - mu) * jax.lax.rsqrt(var + EPS) * gamma + beta


def r_critic_seq_kernel(
    # per-step inputs (leading T axis squeezed by BlockSpec)
    state_ref, masks_ref, h0_ref,
    # feature_norm
    g0_ref, be0_ref,
    # fc1
    w1_ref, b1_ref, g1_ref, be1_ref,
    # fc2
    w2_ref, b2_ref, g2_ref, be2_ref,
    # GRU (gates fused along output axis: [r | z | n])
    wi_ref, wh_ref, bi_ref, bh_ref,
    # rnn output LayerNorm
    gr_ref, br_ref,
    # v_out
    wv_ref, bv_ref,
    # outputs
    values_ref, h_out_ref,
    # scratch: GRU hidden carried across the T grid steps
    h_carry,
    *, inv_s, inv_h,
):
    t = pl.program_id(0)
    hp = h_out_ref.shape[-1]

    @pl.when(t == 0)
    def _():
        h_carry[...] = h0_ref[...]

    def mm(a, w_ref):
        w = w_ref[...]                      # weights pre-cast (e.g. bf16) at init time
        return jnp.dot(a.astype(w.dtype), w, preferred_element_type=jnp.float32)

    # ---- MLPBase ----
    x = _layer_norm(state_ref[...], g0_ref[...], be0_ref[...], inv_s)
    x = _layer_norm(jnp.maximum(mm(x, w1_ref) + b1_ref[...], 0.0),
                    g1_ref[...], be1_ref[...], inv_h)
    x = _layer_norm(jnp.maximum(mm(x, w2_ref) + b2_ref[...], 0.0),
                    g2_ref[...], be2_ref[...], inv_h)

    # ---- RNNLayer: one GRU step with mask-reset hidden ----
    h_prev = h_carry[...] * masks_ref[...]
    gi = mm(x, wi_ref) + bi_ref[...]        # (B, 3*Hp): [r | z | n]
    gh = mm(h_prev, wh_ref) + bh_ref[...]   # (B, 3*Hp)
    r = jax.nn.sigmoid(gi[:, :hp] + gh[:, :hp])
    z = jax.nn.sigmoid(gi[:, hp:2 * hp] + gh[:, hp:2 * hp])
    n = jnp.tanh(gi[:, 2 * hp:] + r * gh[:, 2 * hp:])
    h_new = (1.0 - z) * n + z * h_prev

    h_carry[...] = h_new                    # carry to next timestep
    h_out_ref[...] = h_new                  # constant out-block: written back once

    feat = _layer_norm(h_new, gr_ref[...], br_ref[...], inv_h)

    # ---- v_out: hidden -> 1 as a VPU/XLU lane reduction (no N=1 MXU matmul) ----
    values_ref[...] = jnp.sum(feat * wv_ref[...], axis=-1, keepdims=True) + bv_ref[...]


def pad_params(params, state_dim, hidden, matmul_dtype=jnp.bfloat16):
    """One-time parameter prep (NOT in the per-call path): zero-pad feature dims
    to multiples of 128 lanes and pre-cast matmul weights to `matmul_dtype`.
    Zero columns / gamma / beta in padded lanes keep padding numerically invisible."""
    S, H = state_dim, hidden
    Sp, Hp = _round_up(S), _round_up(H)
    (g0, be0, w1, b1, g1, be1, w2, b2, g2, be2,
     wi, wh, bi, bh, gr, br, wv, bv) = params

    def pad_row(a, n):                       # (1, d) -> (1, n)
        return jnp.pad(a, ((0, 0), (0, n - a.shape[-1])))

    def cast(w):
        return w if matmul_dtype is None else w.astype(matmul_dtype)

    def pad_gru_w(w):                        # (H, 3H) -> (Hp, 3Hp), per-gate column pad
        w3 = jnp.pad(w.reshape(H, 3, H), ((0, Hp - H), (0, 0), (0, Hp - H)))
        return cast(w3.reshape(Hp, 3 * Hp))

    def pad_gru_b(b):                        # (1, 3H) -> (1, 3Hp)
        b3 = jnp.pad(b.reshape(1, 3, H), ((0, 0), (0, 0), (0, Hp - H)))
        return b3.reshape(1, 3 * Hp)

    return (
        pad_row(g0, Sp), pad_row(be0, Sp),
        cast(jnp.pad(w1, ((0, Sp - S), (0, Hp - H)))), pad_row(b1, Hp),
        pad_row(g1, Hp), pad_row(be1, Hp),
        cast(jnp.pad(w2, ((0, Hp - H), (0, Hp - H)))), pad_row(b2, Hp),
        pad_row(g2, Hp), pad_row(be2, Hp),
        pad_gru_w(wi), pad_gru_w(wh), pad_gru_b(bi), pad_gru_b(bh),
        pad_row(gr, Hp), pad_row(br, Hp),
        pad_row(wv.reshape(1, H), Hp), bv.reshape(1, 1),
    )


@partial(jax.jit, static_argnames=("s_real", "h_real"))
def r_critic_forward_seq(states, masks, h0_p, padded_params, *, s_real, h_real):
    """T-step fused rollout.
      states: (T, B, s_real) f32, masks: (T, B, 1), h0_p: (B, Hp) padded hidden.
    Returns (values (T, B, 1) f32, final hidden (B, Hp) f32, padded lane-dense)."""
    T, B, S = states.shape
    Hp = h0_p.shape[-1]
    Sp = padded_params[2].shape[0]           # w1_p is (Sp, Hp)
    assert S == s_real

    # Only per-call padding: one jnp.pad of the whole (T, B, S) state slab.
    states_p = jnp.pad(states, ((0, 0), (0, 0), (0, Sp - S)))
    masks = masks.astype(jnp.float32)

    def const_spec(a):
        nd = a.ndim
        return pl.BlockSpec(a.shape, lambda t, _n=nd: (0,) * _n)

    in_specs = [
        pl.BlockSpec((None, B, Sp), lambda t: (t, 0, 0)),   # state[t]
        pl.BlockSpec((None, B, 1), lambda t: (t, 0, 0)),    # masks[t]
        const_spec(h0_p),                                   # initial hidden (resident)
    ] + [const_spec(p) for p in padded_params]              # weights VMEM-resident

    out_specs = (
        pl.BlockSpec((None, B, 1), lambda t: (t, 0, 0)),    # values[t]
        pl.BlockSpec((B, Hp), lambda t: (0, 0)),            # final hidden (resident)
    )

    weight_bytes = sum(int(p.size) * p.dtype.itemsize for p in padded_params)
    io_bytes = 4 * (states_p.size + masks.size + h0_p.size + T * B + B * Hp)
    flops = 2 * T * B * (Sp * Hp + Hp * Hp + 2 * Hp * 3 * Hp)
    cost = pl.CostEstimate(flops=flops, transcendentals=3 * T * B * Hp,
                           bytes_accessed=weight_bytes + io_bytes)

    kernel = partial(r_critic_seq_kernel, inv_s=1.0 / s_real, inv_h=1.0 / h_real)

    values, h_out_p = pl.pallas_call(
        kernel,
        grid_spec=pltpu.PrefetchScalarGridSpec(
            num_scalar_prefetch=0,
            grid=(T,),
            in_specs=in_specs,
            out_specs=out_specs,
            scratch_shapes=[pltpu.VMEM((B, Hp), jnp.float32)],   # hidden carry
        ),
        out_shape=(
            jax.ShapeDtypeStruct((T, B, 1), jnp.float32),
            jax.ShapeDtypeStruct((B, Hp), jnp.float32),
        ),
        compiler_params=pltpu.CompilerParams(dimension_semantics=("arbitrary",)),
        cost_estimate=cost,
    )(states_p, masks, h0_p, *padded_params)

    return values, h_out_p


def r_critic_forward(state, masks, rnn_hidden, padded_params, *, s_real, h_real):
    """Single-step API matching R_Critic.forward(state, masks, rnn_hidden_states)."""
    Hp = padded_params[2].shape[1]            # w1_p is (Sp, Hp)
    h0_p = jnp.pad(rnn_hidden, ((0, 0), (0, Hp - rnn_hidden.shape[-1])))
    values, h_out_p = r_critic_forward_seq(state[None], masks[None], h0_p,
                                           padded_params, s_real=s_real, h_real=h_real)
    return values[0], h_out_p[:, :h_real]


def init_params(key, state_dim, hidden):
    """Deterministic synthetic parameters (shapes match the PyTorch module, with GRU
    gate weights pre-fused as (in, 3*hidden) in PyTorch order r, z, n)."""
    ks = jax.random.split(key, 5)
    f32 = jnp.float32

    def lin(k, fan_in, shape):
        return jax.random.normal(k, shape, f32) / jnp.sqrt(f32(fan_in))

    g0 = jnp.ones((1, state_dim), f32)
    be0 = jnp.zeros((1, state_dim), f32)
    w1 = lin(ks[0], state_dim, (state_dim, hidden))
    b1 = jnp.zeros((1, hidden), f32)
    g1 = jnp.ones((1, hidden), f32)
    be1 = jnp.zeros((1, hidden), f32)
    w2 = lin(ks[1], hidden, (hidden, hidden))
    b2 = jnp.zeros((1, hidden), f32)
    g2 = jnp.ones((1, hidden), f32)
    be2 = jnp.zeros((1, hidden), f32)
    wi = lin(ks[2], hidden, (hidden, 3 * hidden))
    wh = lin(ks[3], hidden, (hidden, 3 * hidden))
    bi = jnp.zeros((1, 3 * hidden), f32)
    bh = jnp.zeros((1, 3 * hidden), f32)
    gr = jnp.ones((1, hidden), f32)
    br = jnp.zeros((1, hidden), f32)
    wv = lin(ks[4], hidden, (hidden, 1))
    bv = jnp.zeros((1, 1), f32)

    return (g0, be0, w1, b1, g1, be1, w2, b2, g2, be2,
            wi, wh, bi, bh, gr, br, wv, bv)


def r_critic_reference(state, masks, rnn_hidden, params):
    """Pure-JAX single-step reference with identical semantics (unpadded, f32)."""
    (g0, be0, w1, b1, g1, be1, w2, b2, g2, be2,
     wi, wh, bi, bh, gr, br, wv, bv) = params
    H = rnn_hidden.shape[-1]

    def ln(x, g, b):
        mu = jnp.mean(x, axis=-1, keepdims=True)
        var = jnp.mean((x - mu) ** 2, axis=-1, keepdims=True)
        return (x - mu) * jax.lax.rsqrt(var + EPS) * g + b

    x = ln(state, g0, be0)
    x = ln(jnp.maximum(x @ w1 + b1, 0.0), g1, be1)
    x = ln(jnp.maximum(x @ w2 + b2, 0.0), g2, be2)
    h = rnn_hidden * masks
    gi = x @ wi + bi
    gh = h @ wh + bh
    r = jax.nn.sigmoid(gi[:, :H] + gh[:, :H])
    z = jax.nn.sigmoid(gi[:, H:2 * H] + gh[:, H:2 * H])
    n = jnp.tanh(gi[:, 2 * H:] + r * gh[:, 2 * H:])
    h_new = (1.0 - z) * n + z * h
    feat = ln(h_new, gr, br)
    return feat @ wv + bv, h_new


def r_critic_reference_seq(states, masks, rnn_hidden, params):
    values = []
    h = rnn_hidden
    for t in range(states.shape[0]):
        v, h = r_critic_reference(states[t], masks[t], h, params)
        values.append(v)
    return jnp.stack(values), h


if __name__ == "__main__":
    B, STATE_DIM, HIDDEN, T = 8, 48, 64, 6

    key = jax.random.PRNGKey(0)
    k_state, k_hidden, k_params = jax.random.split(key, 3)

    states = jax.random.normal(k_state, (T, B, STATE_DIM), jnp.float32)
    rnn_hidden = jax.random.normal(k_hidden, (B, HIDDEN), jnp.float32)
    masks = jnp.ones((T, B, 1), jnp.float32)
    masks = masks.at[0, 0, 0].set(0.0)   # reset env 0's hidden at t=0
    masks = masks.at[3, 2, 0].set(0.0)   # reset env 2's hidden at t=3

    params = init_params(k_params, STATE_DIM, HIDDEN)
    ref_values, ref_hidden = r_critic_reference_seq(states, masks, rnn_hidden, params)

    Hp = _round_up(HIDDEN)
    h0_p = jnp.pad(rnn_hidden, ((0, 0), (0, Hp - HIDDEN)))

    # --- default fast path: bf16 matmul operands (MXU-native on v5e/v6e/v7x) ---
    pparams_bf16 = pad_params(params, STATE_DIM, HIDDEN, matmul_dtype=jnp.bfloat16)
    values_bf16, h_bf16 = r_critic_forward_seq(states, masks, h0_p, pparams_bf16,
                                               s_real=STATE_DIM, h_real=HIDDEN)
    jax.block_until_ready((values_bf16, h_bf16))

    # --- f32 matmuls for a tight numerical check ---
    pparams_f32 = pad_params(params, STATE_DIM, HIDDEN, matmul_dtype=None)
    values_f32, h_f32 = r_critic_forward_seq(states, masks, h0_p, pparams_f32,
                                             s_real=STATE_DIM, h_real=HIDDEN)
    jax.block_until_ready((values_f32, h_f32))

    # --- single-step compat API (matches R_Critic.forward signature) ---
    v1, h1 = r_critic_forward(states[0], masks[0], rnn_hidden, pparams_f32,
                              s_real=STATE_DIM, h_real=HIDDEN)
    rv1, rh1 = r_critic_reference(states[0], masks[0], rnn_hidden, params)

    assert values_bf16.shape == (T, B, 1) and h_bf16.shape == (B, Hp)
    assert bool(jnp.all(jnp.isfinite(values_bf16))) and bool(jnp.all(jnp.isfinite(h_bf16)))

    # f32 path: tight tolerance
    assert bool(jnp.allclose(values_f32, ref_values, rtol=1e-3, atol=1e-3))
    assert bool(jnp.allclose(h_f32[:, :HIDDEN], ref_hidden, rtol=1e-3, atol=1e-3))
    assert bool(jnp.allclose(v1, rv1, rtol=1e-3, atol=1e-3))
    assert bool(jnp.allclose(h1, rh1, rtol=1e-3, atol=1e-3))

    # bf16 path: loosened tolerance (bf16 operand rounding, f32 accumulation)
    assert bool(jnp.allclose(values_bf16, ref_values, rtol=3e-2, atol=3e-2))
    assert bool(jnp.allclose(h_bf16[:, :HIDDEN], ref_hidden, rtol=3e-2, atol=3e-2))

    print("KERNEL_OK")
</pallas_src>

<mosaic_0001>
module attributes {stable_mosaic.version = 11 : i64} {
  func.func @r_critic_seq_kernel(%arg0: i32, %arg1: memref<1x8x128xf32, #tpu.memory_space<vmem>>, %arg2: memref<1x8x1xf32, #tpu.memory_space<vmem>>, %arg3: memref<8x128xf32, #tpu.memory_space<vmem>>, %arg4: memref<1x128xf32, #tpu.memory_space<vmem>>, %arg5: memref<1x128xf32, #tpu.memory_space<vmem>>, %arg6: memref<128x128xbf16, #tpu.memory_space<vmem>>, %arg7: memref<1x128xf32, #tpu.memory_space<vmem>>, %arg8: memref<1x128xf32, #tpu.memory_space<vmem>>, %arg9: memref<1x128xf32, #tpu.memory_space<vmem>>, %arg10: memref<128x128xbf16, #tpu.memory_space<vmem>>, %arg11: memref<1x128xf32, #tpu.memory_space<vmem>>, %arg12: memref<1x128xf32, #tpu.memory_space<vmem>>, %arg13: memref<1x128xf32, #tpu.memory_space<vmem>>, %arg14: memref<128x384xbf16, #tpu.memory_space<vmem>>, %arg15: memref<128x384xbf16, #tpu.memory_space<vmem>>, %arg16: memref<1x384xf32, #tpu.memory_space<vmem>>, %arg17: memref<1x384xf32, #tpu.memory_space<vmem>>, %arg18: memref<1x128xf32, #tpu.memory_space<vmem>>, %arg19: memref<1x128xf32, #tpu.memory_space<vmem>>, %arg20: memref<1x128xf32, #tpu.memory_space<vmem>>, %arg21: memref<1x1xf32, #tpu.memory_space<vmem>>, %arg22: memref<1x8x1xf32, #tpu.memory_space<vmem>>, %arg23: memref<8x128xf32, #tpu.memory_space<vmem>>, %arg24: memref<8x128xf32, #tpu.memory_space<vmem>>) attributes {dimension_semantics = [#tpu.dimension_semantics<arbitrary>], iteration_bounds = array<i64: 6>, scalar_prefetch = 0 : i64, scratch_operands = 1 : i64, tpu.core_type = #tpu.core_type<tc>, window_params = [{transform_indices = @transform_0, window_bounds = array<i64: 1, 8, 128>}, {transform_indices = @transform_1, window_bounds = array<i64: 1, 8, 1>}, {pipeline_mode = #tpu.pipeline_mode<synchronous>, transform_indices = @transform_2, window_bounds = array<i64: 8, 128>}, {pipeline_mode = #tpu.pipeline_mode<synchronous>, transform_indices = @transform_3, window_bounds = array<i64: 1, 128>}, {pipeline_mode = #tpu.pipeline_mode<synchronous>, transform_indices = @transform_4, window_bounds = array<i64: 1, 128>}, {pipeline_mode = #tpu.pipeline_mode<synchronous>, transform_indices = @transform_5, window_bounds = array<i64: 128, 128>}, {pipeline_mode = #tpu.pipeline_mode<synchronous>, transform_indices = @transform_6, window_bounds = array<i64: 1, 128>}, {pipeline_mode = #tpu.pipeline_mode<synchronous>, transform_indices = @transform_7, window_bounds = array<i64: 1, 128>}, {pipeline_mode = #tpu.pipeline_mode<synchronous>, transform_indices = @transform_8, window_bounds = array<i64: 1, 128>}, {pipeline_mode = #tpu.pipeline_mode<synchronous>, transform_indices = @transform_9, window_bounds = array<i64: 128, 128>}, {pipeline_mode = #tpu.pipeline_mode<synchronous>, transform_indices = @transform_10, window_bounds = array<i64: 1, 128>}, {pipeline_mode = #tpu.pipeline_mode<synchronous>, transform_indices = @transform_11, window_bounds = array<i64: 1, 128>}, {pipeline_mode = #tpu.pipeline_mode<synchronous>, transform_indices = @transform_12, window_bounds = array<i64: 1, 128>}, {pipeline_mode = #tpu.pipeline_mode<synchronous>, transform_indices = @transform_13, window_bounds = array<i64: 128, 384>}, {pipeline_mode = #tpu.pipeline_mode<synchronous>, transform_indices = @transform_14, window_bounds = array<i64: 128, 384>}, {pipeline_mode = #tpu.pipeline_mode<synchronous>, transform_indices = @transform_15, window_bounds = array<i64: 1, 384>}, {pipeline_mode = #tpu.pipeline_mode<synchronous>, transform_indices = @transform_16, window_bounds = array<i64: 1, 384>}, {pipeline_mode = #tpu.pipeline_mode<synchronous>, transform_indices = @transform_17, window_bounds = array<i64: 1, 128>}, {pipeline_mode = #tpu.pipeline_mode<synchronous>, transform_indices = @transform_18, window_bounds = array<i64: 1, 128>}, {pipeline_mode = #tpu.pipeline_mode<synchronous>, transform_indices = @transform_19, window_bounds = array<i64: 1, 128>}, {pipeline_mode = #tpu.pipeline_mode<synchronous>, transform_indices = @transform_20, window_bounds = array<i64: 1, 1>}, {transform_indices = @transform_21, window_bounds = array<i64: 1, 8, 1>}, {pipeline_mode = #tpu.pipeline_mode<synchronous>, transform_indices = @transform_22, window_bounds = array<i64: 8, 128>}]} {
    %c0_i32 = arith.constant 0 : i32
    %0 = arith.cmpi eq, %arg0, %c0_i32 : i32
    %1 = arith.extui %0 : i1 to i32
    %c0_i32_0 = arith.constant 0 : i32
    %2 = arith.cmpi ne, %1, %c0_i32_0 : i32
    scf.if %2 {
      %c0_80 = arith.constant 0 : index
      %c0_81 = arith.constant 0 : index
      %173 = vector.load %arg3[%c0_80, %c0_81] : memref<8x128xf32, #tpu.memory_space<vmem>>, vector<8x128xf32>
      %c0_82 = arith.constant 0 : index
      %c0_83 = arith.constant 0 : index
      %174 = vector.load %arg24[%c0_82, %c0_83] : memref<8x128xf32, #tpu.memory_space<vmem>>, vector<8x128xf32>
      tpu.vector_store %arg24[%c0_82, %c0_83], %173 {strides = array<i32>} : memref<8x128xf32, #tpu.memory_space<vmem>>, vector<8x128xf32>,
    } else {
    }
    %c0 = arith.constant 0 : index
    %c0_1 = arith.constant 0 : index
    %c0_2 = arith.constant 0 : index
    %3 = vector.load %arg1[%c0, %c0_1, %c0_2] : memref<1x8x128xf32, #tpu.memory_space<vmem>>, vector<1x8x128xf32>
    %4 = vector.shape_cast %3 : vector<1x8x128xf32> to vector<8x128xf32>
    %c0_3 = arith.constant 0 : index
    %c0_4 = arith.constant 0 : index
    %5 = vector.load %arg4[%c0_3, %c0_4] : memref<1x128xf32, #tpu.memory_space<vmem>>, vector<1x128xf32>
    %c0_5 = arith.constant 0 : index
    %c0_6 = arith.constant 0 : index
    %6 = vector.load %arg5[%c0_5, %c0_6] : memref<1x128xf32, #tpu.memory_space<vmem>>, vector<1x128xf32>
    %cst = arith.constant dense<0.000000e+00> : vector<8xf32>
    %7 = vector.multi_reduction <add>, %4, %cst [1] : vector<8x128xf32> to vector<8xf32>
    %8 = vector.shape_cast %7 : vector<8xf32> to vector<8x1xf32>
    %cst_7 = arith.constant 0.020833334 : f32
    %9 = vector.broadcast %cst_7 : f32 to vector<8x1xf32>
    %10 = arith.mulf %8, %9 : vector<8x1xf32>
    %11 = arith.mulf %4, %4 : vector<8x128xf32>
    %cst_8 = arith.constant dense<0.000000e+00> : vector<8xf32>
    %12 = vector.multi_reduction <add>, %11, %cst_8 [1] : vector<8x128xf32> to vector<8xf32>
    %13 = vector.shape_cast %12 : vector<8xf32> to vector<8x1xf32>
    %cst_9 = arith.constant 0.020833334 : f32
    %14 = vector.broadcast %cst_9 : f32 to vector<8x1xf32>
    %15 = arith.mulf %13, %14 : vector<8x1xf32>
    %16 = arith.mulf %10, %10 : vector<8x1xf32>
    %17 = arith.subf %15, %16 : vector<8x1xf32>
    %18 = vector.broadcast %10 : vector<8x1xf32> to vector<8x128xf32>
    %19 = arith.subf %4, %18 : vector<8x128xf32>
    %cst_10 = arith.constant 9.99999974E-6 : f32
    %20 = vector.broadcast %cst_10 : f32 to vector<8x1xf32>
    %21 = arith.addf %17, %20 : vector<8x1xf32>
    %22 = math.rsqrt %21 : vector<8x1xf32>
    %23 = vector.broadcast %22 : vector<8x1xf32> to vector<8x128xf32>
    %24 = arith.mulf %19, %23 : vector<8x128xf32>
    %25 = vector.broadcast %5 : vector<1x128xf32> to vector<8x128xf32>
    %26 = arith.mulf %24, %25 : vector<8x128xf32>
    %27 = vector.broadcast %6 : vector<1x128xf32> to vector<8x128xf32>
    %28 = arith.addf %26, %27 : vector<8x128xf32>
    %c0_11 = arith.constant 0 : index
    %c0_12 = arith.constant 0 : index
    %29 = vector.load %arg6[%c0_11, %c0_12] : memref<128x128xbf16, #tpu.memory_space<vmem>>, vector<128x128xbf16>
    %30 = arith.truncf %28 : vector<8x128xf32> to vector<8x128xbf16>
    %cst_13 = arith.constant dense<0.000000e+00> : vector<8x128xf32>
    %31 = tpu.matmul %30, %29, %cst_13 {dimension_numbers = #tpu.dot_dimension_numbers<[1], [0], [0], [1], [0, 0, 1, 1], [], []>} : vector<8x128xbf16>, vector<128x128xbf16>, vector<8x128xf32> -> vector<8x128xf32>
    %c0_14 = arith.constant 0 : index
    %c0_15 = arith.constant 0 : index
    %32 = vector.load %arg7[%c0_14, %c0_15] : memref<1x128xf32, #tpu.memory_space<vmem>>, vector<1x128xf32>
    %33 = vector.broadcast %32 : vector<1x128xf32> to vector<8x128xf32>
    %34 = arith.addf %31, %33 : vector<8x128xf32>
    %cst_16 = arith.constant 0.000000e+00 : f32
    %35 = vector.broadcast %cst_16 : f32 to vector<8x128xf32>
    %36 = arith.maximumf %34, %35 : vector<8x128xf32>
    %c0_17 = arith.constant 0 : index
    %c0_18 = arith.constant 0 : index
    %37 = vector.load %arg8[%c0_17, %c0_18] : memref<1x128xf32, #tpu.memory_space<vmem>>, vector<1x128xf32>
    %c0_19 = arith.constant 0 : index
    %c0_20 = arith.constant 0 : index
    %38 = vector.load %arg9[%c0_19, %c0_20] : memref<1x128xf32, #tpu.memory_space<vmem>>, vector<1x128xf32>
    %cst_21 = arith.constant dense<0.000000e+00> : vector<8xf32>
    %39 = vector.multi_reduction <add>, %36, %cst_21 [1] : vector<8x128xf32> to vector<8xf32>
    %40 = vector.shape_cast %39 : vector<8xf32> to vector<8x1xf32>
    %cst_22 = arith.constant 1.562500e-02 : f32
    %41 = vector.broadcast %cst_22 : f32 to vector<8x1xf32>
    %42 = arith.mulf %40, %41 : vector<8x1xf32>
    %43 = arith.mulf %36, %36 : vector<8x128xf32>
    %cst_23 = arith.constant dense<0.000000e+00> : vector<8xf32>
    %44 = vector.multi_reduction <add>, %43, %cst_23 [1] : vector<8x128xf32> to vector<8xf32>
    %45 = vector.shape_cast %44 : vector<8xf32> to vector<8x1xf32>
    %cst_24 = arith.constant 1.562500e-02 : f32
    %46 = vector.broadcast %cst_24 : f32 to vector<8x1xf32>
    %47 = arith.mulf %45, %46 : vector<8x1xf32>
    %48 = arith.mulf %42, %42 : vector<8x1xf32>
    %49 = arith.subf %47, %48 : vector<8x1xf32>
    %50 = vector.broadcast %42 : vector<8x1xf32> to vector<8x128xf32>
    %51 = arith.subf %36, %50 : vector<8x128xf32>
    %cst_25 = arith.constant 9.99999974E-6 : f32
    %52 = vector.broadcast %cst_25 : f32 to vector<8x1xf32>
    %53 = arith.addf %49, %52 : vector<8x1xf32>
    %54 = math.rsqrt %53 : vector<8x1xf32>
    %55 = vector.broadcast %54 : vector<8x1xf32> to vector<8x128xf32>
    %56 = arith.mulf %51, %55 : vector<8x128xf32>
    %57 = vector.broadcast %37 : vector<1x128xf32> to vector<8x128xf32>
    %58 = arith.mulf %56, %57 : vector<8x128xf32>
    %59 = vector.broadcast %38 : vector<1x128xf32> to vector<8x128xf32>
    %60 = arith.addf %58, %59 : vector<8x128xf32>
    %c0_26 = arith.constant 0 : index
    %c0_27 = arith.constant 0 : index
    %61 = vector.load %arg10[%c0_26, %c0_27] : memref<128x128xbf16, #tpu.memory_space<vmem>>, vector<128x128xbf16>
    %62 = arith.truncf %60 : vector<8x128xf32> to vector<8x128xbf16>
    %cst_28 = arith.constant dense<0.000000e+00> : vector<8x128xf32>
    %63 = tpu.matmul %62, %61, %cst_28 {dimension_numbers = #tpu.dot_dimension_numbers<[1], [0], [0], [1], [0, 0, 1, 1], [], []>} : vector<8x128xbf16>, vector<128x128xbf16>, vector<8x128xf32> -> vector<8x128xf32>
    %c0_29 = arith.constant 0 : index
    %c0_30 = arith.constant 0 : index
    %64 = vector.load %arg11[%c0_29, %c0_30] : memref<1x128xf32, #tpu.memory_space<vmem>>, vector<1x128xf32>
    %65 = vector.broadcast %64 : vector<1x128xf32> to vector<8x128xf32>
    %66 = arith.addf %63, %65 : vector<8x128xf32>
    %cst_31 = arith.constant 0.000000e+00 : f32
    %67 = vector.broadcast %cst_31 : f32 to vector<8x128xf32>
    %68 = arith.maximumf %66, %67 : vector<8x128xf32>
    %c0_32 = arith.constant 0 : index
    %c0_33 = arith.constant 0 : index
    %69 = vector.load %arg12[%c0_32, %c0_33] : memref<1x128xf32, #tpu.memory_space<vmem>>, vector<1x128xf32>
    %c0_34 = arith.constant 0 : index
    %c0_35 = arith.constant 0 : index
    %70 = vector.load %arg13[%c0_34, %c0_35] : memref<1x128xf32, #tpu.memory_space<vmem>>, vector<1x128xf32>
    %cst_36 = arith.constant dense<0.000000e+00> : vector<8xf32>
    %71 = vector.multi_reduction <add>, %68, %cst_36 [1] : vector<8x128xf32> to vector<8xf32>
    %72 = vector.shape_cast %71 : vector<8xf32> to vector<8x1xf32>
    %cst_37 = arith.constant 1.562500e-02 : f32
    %73 = vector.broadcast %cst_37 : f32 to vector<8x1xf32>
    %74 = arith.mulf %72, %73 : vector<8x1xf32>
    %75 = arith.mulf %68, %68 : vector<8x128xf32>
    %cst_38 = arith.constant dense<0.000000e+00> : vector<8xf32>
    %76 = vector.multi_reduction <add>, %75, %cst_38 [1] : vector<8x128xf32> to vector<8xf32>
    %77 = vector.shape_cast %76 : vector<8xf32> to vector<8x1xf32>
    %cst_39 = arith.constant 1.562500e-02 : f32
    %78 = vector.broadcast %cst_39 : f32 to vector<8x1xf32>
    %79 = arith.mulf %77, %78 : vector<8x1xf32>
    %80 = arith.mulf %74, %74 : vector<8x1xf32>
    %81 = arith.subf %79, %80 : vector<8x1xf32>
    %82 = vector.broadcast %74 : vector<8x1xf32> to vector<8x128xf32>
    %83 = arith.subf %68, %82 : vector<8x128xf32>
    %cst_40 = arith.constant 9.99999974E-6 : f32
    %84 = vector.broadcast %cst_40 : f32 to vector<8x1xf32>
    %85 = arith.addf %81, %84 : vector<8x1xf32>
    %86 = math.rsqrt %85 : vector<8x1xf32>
    %87 = vector.broadcast %86 : vector<8x1xf32> to vector<8x128xf32>
    %88 = arith.mulf %83, %87 : vector<8x128xf32>
    %89 = vector.broadcast %69 : vector<1x128xf32> to vector<8x128xf32>
    %90 = arith.mulf %88, %89 : vector<8x128xf32>
    %91 = vector.broadcast %70 : vector<1x128xf32> to vector<8x128xf32>
    %92 = arith.addf %90, %91 : vector<8x128xf32>
    %c0_41 = arith.constant 0 : index
    %c0_42 = arith.constant 0 : index
    %93 = vector.load %arg24[%c0_41, %c0_42] : memref<8x128xf32, #tpu.memory_space<vmem>>, vector<8x128xf32>
    %c0_43 = arith.constant 0 : index
    %c0_44 = arith.constant 0 : index
    %c0_45 = arith.constant 0 : index
    %94 = vector.load %arg2[%c0_43, %c0_44, %c0_45] : memref<1x8x1xf32, #tpu.memory_space<vmem>>, vector<1x8x1xf32>
    %95 = vector.shape_cast %94 : vector<1x8x1xf32> to vector<8x1xf32>
    %96 = vector.broadcast %95 : vector<8x1xf32> to vector<8x128xf32>
    %97 = arith.mulf %93, %96 : vector<8x128xf32>
    %c0_46 = arith.constant 0 : index
    %c0_47 = arith.constant 0 : index
    %98 = vector.load %arg14[%c0_46, %c0_47] : memref<128x384xbf16, #tpu.memory_space<vmem>>, vector<128x384xbf16>
    %99 = arith.truncf %92 : vector<8x128xf32> to vector<8x128xbf16>
    %cst_48 = arith.constant dense<0.000000e+00> : vector<8x384xf32>
    %100 = tpu.matmul %99, %98, %cst_48 {dimension_numbers = #tpu.dot_dimension_numbers<[1], [0], [0], [1], [0, 0, 1, 1], [], []>} : vector<8x128xbf16>, vector<128x384xbf16>, vector<8x384xf32> -> vector<8x384xf32>
    %c0_49 = arith.constant 0 : index
    %c0_50 = arith.constant 0 : index
    %101 = vector.load %arg16[%c0_49, %c0_50] : memref<1x384xf32, #tpu.memory_space<vmem>>, vector<1x384xf32>
    %102 = vector.broadcast %101 : vector<1x384xf32> to vector<8x384xf32>
    %103 = arith.addf %100, %102 : vector<8x384xf32>
    %c0_51 = arith.constant 0 : index
    %c0_52 = arith.constant 0 : index
    %104 = vector.load %arg15[%c0_51, %c0_52] : memref<128x384xbf16, #tpu.memory_space<vmem>>, vector<128x384xbf16>
    %105 = arith.truncf %97 : vector<8x128xf32> to vector<8x128xbf16>
    %cst_53 = arith.constant dense<0.000000e+00> : vector<8x384xf32>
    %106 = tpu.matmul %105, %104, %cst_53 {dimension_numbers = #tpu.dot_dimension_numbers<[1], [0], [0], [1], [0, 0, 1, 1], [], []>} : vector<8x128xbf16>, vector<128x384xbf16>, vector<8x384xf32> -> vector<8x384xf32>
    %c0_54 = arith.constant 0 : index
    %c0_55 = arith.constant 0 : index
    %107 = vector.load %arg17[%c0_54, %c0_55] : memref<1x384xf32, #tpu.memory_space<vmem>>, vector<1x384xf32>
    %108 = vector.broadcast %107 : vector<1x384xf32> to vector<8x384xf32>
    %109 = arith.addf %106, %108 : vector<8x384xf32>
    %110 = vector.extract_strided_slice %103 {offsets = [0, 0], sizes = [8, 128], strides = [1, 1]} : vector<8x384xf32> to vector<8x128xf32>
    %111 = vector.extract_strided_slice %109 {offsets = [0, 0], sizes = [8, 128], strides = [1, 1]} : vector<8x384xf32> to vector<8x128xf32>
    %112 = arith.addf %110, %111 : vector<8x128xf32>
    %113 = arith.negf %112 : vector<8x128xf32>
    %114 = math.exp %113 : vector<8x128xf32>
    %cst_56 = arith.constant 1.000000e+00 : f32
    %115 = vector.broadcast %cst_56 : f32 to vector<8x128xf32>
    %116 = arith.addf %115, %114 : vector<8x128xf32>
    %117 = arith.divf %115, %116 : vector<8x128xf32>
    %118 = vector.extract_strided_slice %103 {offsets = [0, 128], sizes = [8, 128], strides = [1, 1]} : vector<8x384xf32> to vector<8x128xf32>
    %119 = vector.extract_strided_slice %109 {offsets = [0, 128], sizes = [8, 128], strides = [1, 1]} : vector<8x384xf32> to vector<8x128xf32>
    %120 = arith.addf %118, %119 : vector<8x128xf32>
    %121 = arith.negf %120 : vector<8x128xf32>
    %122 = math.exp %121 : vector<8x128xf32>
    %cst_57 = arith.constant 1.000000e+00 : f32
    %123 = vector.broadcast %cst_57 : f32 to vector<8x128xf32>
    %124 = arith.addf %123, %122 : vector<8x128xf32>
    %125 = arith.divf %123, %124 : vector<8x128xf32>
    %126 = vector.extract_strided_slice %103 {offsets = [0, 256], sizes = [8, 128], strides = [1, 1]} : vector<8x384xf32> to vector<8x128xf32>
    %127 = vector.extract_strided_slice %109 {offsets = [0, 256], sizes = [8, 128], strides = [1, 1]} : vector<8x384xf32> to vector<8x128xf32>
    %128 = arith.mulf %117, %127 : vector<8x128xf32>
    %129 = arith.addf %126, %128 : vector<8x128xf32>
    %130 = math.tanh %129 : vector<8x128xf32>
    %cst_58 = arith.constant 1.000000e+00 : f32
    %131 = vector.broadcast %cst_58 : f32 to vector<8x128xf32>
    %132 = arith.subf %131, %125 : vector<8x128xf32>
    %133 = arith.mulf %132, %130 : vector<8x128xf32>
    %134 = arith.mulf %125, %97 : vector<8x128xf32>
    %135 = arith.addf %133, %134 : vector<8x128xf32>
    %c0_59 = arith.constant 0 : index
    %c0_60 = arith.constant 0 : index
    %136 = vector.load %arg24[%c0_59, %c0_60] : memref<8x128xf32, #tpu.memory_space<vmem>>, vector<8x128xf32>
    tpu.vector_store %arg24[%c0_59, %c0_60], %135 {strides = array<i32>} : memref<8x128xf32, #tpu.memory_space<vmem>>, vector<8x128xf32>,
    %c0_61 = arith.constant 0 : index
    %c0_62 = arith.constant 0 : index
    %137 = vector.load %arg23[%c0_61, %c0_62] : memref<8x128xf32, #tpu.memory_space<vmem>>, vector<8x128xf32>
    tpu.vector_store %arg23[%c0_61, %c0_62], %135 {strides = array<i32>} : memref<8x128xf32, #tpu.memory_space<vmem>>, vector<8x128xf32>,
    %c0_63 = arith.constant 0 : index
    %c0_64 = arith.constant 0 : index
    %138 = vector.load %arg18[%c0_63, %c0_64] : memref<1x128xf32, #tpu.memory_space<vmem>>, vector<1x128xf32>
    %c0_65 = arith.constant 0 : index
    %c0_66 = arith.constant 0 : index
    %139 = vector.load %arg19[%c0_65, %c0_66] : memref<1x128xf32, #tpu.memory_space<vmem>>, vector<1x128xf32>
    %cst_67 = arith.constant dense<0.000000e+00> : vector<8xf32>
    %140 = vector.multi_reduction <add>, %135, %cst_67 [1] : vector<8x128xf32> to vector<8xf32>
    %141 = vector.shape_cast %140 : vector<8xf32> to vector<8x1xf32>
    %cst_68 = arith.constant 1.562500e-02 : f32
    %142 = vector.broadcast %cst_68 : f32 to vector<8x1xf32>
    %143 = arith.mulf %141, %142 : vector<8x1xf32>
    %144 = arith.mulf %135, %135 : vector<8x128xf32>
    %cst_69 = arith.constant dense<0.000000e+00> : vector<8xf32>
    %145 = vector.multi_reduction <add>, %144, %cst_69 [1] : vector<8x128xf32> to vector<8xf32>
    %146 = vector.shape_cast %145 : vector<8xf32> to vector<8x1xf32>
    %cst_70 = arith.constant 1.562500e-02 : f32
    %147 = vector.broadcast %cst_70 : f32 to vector<8x1xf32>
    %148 = arith.mulf %146, %147 : vector<8x1xf32>
    %149 = arith.mulf %143, %143 : vector<8x1xf32>
    %150 = arith.subf %148, %149 : vector<8x1xf32>
    %151 = vector.broadcast %143 : vector<8x1xf32> to vector<8x128xf32>
    %152 = arith.subf %135, %151 : vector<8x128xf32>
    %cst_71 = arith.constant 9.99999974E-6 : f32
    %153 = vector.broadcast %cst_71 : f32 to vector<8x1xf32>
    %154 = arith.addf %150, %153 : vector<8x1xf32>
    %155 = math.rsqrt %154 : vector<8x1xf32>
    %156 = vector.broadcast %155 : vector<8x1xf32> to vector<8x128xf32>
    %157 = arith.mulf %152, %156 : vector<8x128xf32>
    %158 = vector.broadcast %138 : vector<1x128xf32> to vector<8x128xf32>
    %159 = arith.mulf %157, %158 : vector<8x128xf32>
    %160 = vector.broadcast %139 : vector<1x128xf32> to vector<8x128xf32>
    %161 = arith.addf %159, %160 : vector<8x128xf32>
    %c0_72 = arith.constant 0 : index
    %c0_73 = arith.constant 0 : index
    %162 = vector.load %arg20[%c0_72, %c0_73] : memref<1x128xf32, #tpu.memory_space<vmem>>, vector<1x128xf32>
    %163 = vector.broadcast %162 : vector<1x128xf32> to vector<8x128xf32>
    %164 = arith.mulf %161, %163 : vector<8x128xf32>
    %cst_74 = arith.constant dense<0.000000e+00> : vector<8xf32>
    %165 = vector.multi_reduction <add>, %164, %cst_74 [1] : vector<8x128xf32> to vector<8xf32>
    %166 = vector.shape_cast %165 : vector<8xf32> to vector<8x1xf32>
    %c0_75 = arith.constant 0 : index
    %c0_76 = arith.constant 0 : index
    %167 = vector.load %arg21[%c0_75, %c0_76] : memref<1x1xf32, #tpu.memory_space<vmem>>, vector<1x1xf32>
    %168 = vector.broadcast %167 : vector<1x1xf32> to vector<8x1xf32>
    %169 = arith.addf %166, %168 : vector<8x1xf32>
    %c0_77 = arith.constant 0 : index
    %c0_78 = arith.constant 0 : index
    %c0_79 = arith.constant 0 : index
    %170 = vector.load %arg22[%c0_77, %c0_78, %c0_79] : memref<1x8x1xf32, #tpu.memory_space<vmem>>, vector<1x8x1xf32>
    %171 = vector.shape_cast %170 : vector<1x8x1xf32> to vector<8x1xf32>
    %172 = vector.shape_cast %169 : vector<8x1xf32> to vector<1x8x1xf32>
    tpu.vector_store %arg22[%c0_77, %c0_78, %c0_79], %172 {strides = array<i32>} : memref<1x8x1xf32, #tpu.memory_space<vmem>>, vector<1x8x1xf32>,
    return
  }
  func.func @transform_0(%arg0: i32) -> (i32, i32, i32) {
    %c0_i32 = arith.constant 0 : i32
    %c0_i32_0 = arith.constant 0 : i32
    %c0_i32_1 = arith.constant 0 : i32
    return %arg0, %c0_i32, %c0_i32_0 : i32, i32, i32
  }
  func.func @transform_1(%arg0: i32) -> (i32, i32, i32) {
    %c0_i32 = arith.constant 0 : i32
    %c0_i32_0 = arith.constant 0 : i32
    %c0_i32_1 = arith.constant 0 : i32
    return %arg0, %c0_i32, %c0_i32_0 : i32, i32, i32
  }
  func.func @transform_2(%arg0: i32) -> (i32, i32) {
    %c0_i32 = arith.constant 0 : i32
    %c0_i32_0 = arith.constant 0 : i32
    %c0_i32_1 = arith.constant 0 : i32
    return %c0_i32, %c0_i32_0 : i32, i32
  }
  func.func @transform_3(%arg0: i32) -> (i32, i32) {
    %c0_i32 = arith.constant 0 : i32
    %c0_i32_0 = arith.constant 0 : i32
    %c0_i32_1 = arith.constant 0 : i32
    return %c0_i32, %c0_i32_0 : i32, i32
  }
  func.func @transform_4(%arg0: i32) -> (i32, i32) {
    %c0_i32 = arith.constant 0 : i32
    %c0_i32_0 = arith.constant 0 : i32
    %c0_i32_1 = arith.constant 0 : i32
    return %c0_i32, %c0_i32_0 : i32, i32
  }
  func.func @transform_5(%arg0: i32) -> (i32, i32) {
    %c0_i32 = arith.constant 0 : i32
    %c0_i32_0 = arith.constant 0 : i32
    %c0_i32_1 = arith.constant 0 : i32
    return %c0_i32, %c0_i32_0 : i32, i32
  }
  func.func @transform_6(%arg0: i32) -> (i32, i32) {
    %c0_i32 = arith.constant 0 : i32
    %c0_i32_0 = arith.constant 0 : i32
    %c0_i32_1 = arith.constant 0 : i32
    return %c0_i32, %c0_i32_0 : i32, i32
  }
  func.func @transform_7(%arg0: i32) -> (i32, i32) {
    %c0_i32 = arith.constant 0 : i32
    %c0_i32_0 = arith.constant 0 : i32
    %c0_i32_1 = arith.constant 0 : i32
    return %c0_i32, %c0_i32_0 : i32, i32
  }
  func.func @transform_8(%arg0: i32) -> (i32, i32) {
    %c0_i32 = arith.constant 0 : i32
    %c0_i32_0 = arith.constant 0 : i32
    %c0_i32_1 = arith.constant 0 : i32
    return %c0_i32, %c0_i32_0 : i32, i32
  }
  func.func @transform_9(%arg0: i32) -> (i32, i32) {
    %c0_i32 = arith.constant 0 : i32
    %c0_i32_0 = arith.constant 0 : i32
    %c0_i32_1 = arith.constant 0 : i32
    return %c0_i32, %c0_i32_0 : i32, i32
  }
  func.func @transform_10(%arg0: i32) -> (i32, i32) {
    %c0_i32 = arith.constant 0 : i32
    %c0_i32_0 = arith.constant 0 : i32
    %c0_i32_1 = arith.constant 0 : i32
    return %c0_i32, %c0_i32_0 : i32, i32
  }
  func.func @transform_11(%arg0: i32) -> (i32, i32) {
    %c0_i32 = arith.constant 0 : i32
    %c0_i32_0 = arith.constant 0 : i32
    %c0_i32_1 = arith.constant 0 : i32
    return %c0_i32, %c0_i32_0 : i32, i32
  }
  func.func @transform_12(%arg0: i32) -> (i32, i32) {
    %c0_i32 = arith.constant 0 : i32
    %c0_i32_0 = arith.constant 0 : i32
    %c0_i32_1 = arith.constant 0 : i32
    return %c0_i32, %c0_i32_0 : i32, i32
  }
  func.func @transform_13(%arg0: i32) -> (i32, i32) {
    %c0_i32 = arith.constant 0 : i32
    %c0_i32_0 = arith.constant 0 : i32
    %c0_i32_1 = arith.constant 0 : i32
    return %c0_i32, %c0_i32_0 : i32, i32
  }
  func.func @transform_14(%arg0: i32) -> (i32, i32) {
    %c0_i32 = arith.constant 0 : i32
    %c0_i32_0 = arith.constant 0 : i32
    %c0_i32_1 = arith.constant 0 : i32
    return %c0_i32, %c0_i32_0 : i32, i32
  }
  func.func @transform_15(%arg0: i32) -> (i32, i32) {
    %c0_i32 = arith.constant 0 : i32
    %c0_i32_0 = arith.constant 0 : i32
    %c0_i32_1 = arith.constant 0 : i32
    return %c0_i32, %c0_i32_0 : i32, i32
  }
  func.func @transform_16(%arg0: i32) -> (i32, i32) {
    %c0_i32 = arith.constant 0 : i32
    %c0_i32_0 = arith.constant 0 : i32
    %c0_i32_1 = arith.constant 0 : i32
    return %c0_i32, %c0_i32_0 : i32, i32
  }
  func.func @transform_17(%arg0: i32) -> (i32, i32) {
    %c0_i32 = arith.constant 0 : i32
    %c0_i32_0 = arith.constant 0 : i32
    %c0_i32_1 = arith.constant 0 : i32
    return %c0_i32, %c0_i32_0 : i32, i32
  }
  func.func @transform_18(%arg0: i32) -> (i32, i32) {
    %c0_i32 = arith.constant 0 : i32
    %c0_i32_0 = arith.constant 0 : i32
    %c0_i32_1 = arith.constant 0 : i32
    return %c0_i32, %c0_i32_0 : i32, i32
  }
  func.func @transform_19(%arg0: i32) -> (i32, i32) {
    %c0_i32 = arith.constant 0 : i32
    %c0_i32_0 = arith.constant 0 : i32
    %c0_i32_1 = arith.constant 0 : i32
    return %c0_i32, %c0_i32_0 : i32, i32
  }
  func.func @transform_20(%arg0: i32) -> (i32, i32) {
    %c0_i32 = arith.constant 0 : i32
    %c0_i32_0 = arith.constant 0 : i32
    %c0_i32_1 = arith.constant 0 : i32
    return %c0_i32, %c0_i32_0 : i32, i32
  }
  func.func @transform_21(%arg0: i32) -> (i32, i32, i32) {
    %c0_i32 = arith.constant 0 : i32
    %c0_i32_0 = arith.constant 0 : i32
    %c0_i32_1 = arith.constant 0 : i32
    return %arg0, %c0_i32, %c0_i32_0 : i32, i32, i32
  }
  func.func @transform_22(%arg0: i32) -> (i32, i32) {
    %c0_i32 = arith.constant 0 : i32
    %c0_i32_0 = arith.constant 0 : i32
    %c0_i32_1 = arith.constant 0 : i32
    return %c0_i32, %c0_i32_0 : i32, i32
  }
}

</mosaic_0001>

<bundles_post_ra>
// kernel: r_critic_forward_seq.1
= control target key start
LH: loop header
LB: loop body
LE: loop exit
PB: predicated region body
PF: predicated region fallthrough
CT: control target
= control target key end

     0   :  { %s2456_s0 = inlined_call_operand.vmem [shape: f32[6,8,128], index: 0, kind: input, shape index: {}]   ;;  %s2457_s1 = inlined_call_operand.vmem [shape: f32[6,8,1], index: 1, kind: input, shape index: {}]   ;;  %s2458_s2 = inlined_call_operand.vmem [shape: f32[8,128], index: 2, kind: input, shape index: {}]   ;;  %s2459_s3 = inlined_call_operand.vmem [shape: f32[1,128], index: 3, kind: input, shape index: {}]   ;;  %s2460_s4 = inlined_call_operand.vmem [shape: f32[1,128], index: 4, kind: input, shape index: {}]   ;;  %s2461_s5 = inlined_call_operand.vmem [shape: bf16[128,128], index: 5, kind: input, shape index: {}]   ;;  %s2462_s6 = inlined_call_operand.vmem [shape: f32[1,128], index: 6, kind: input, shape index: {}]   ;;  %s2463_s7 = inlined_call_operand.vmem [shape: f32[1,128], index: 7, kind: input, shape index: {}]   ;;  %s2464_s8 = inlined_call_operand.vmem [shape: f32[1,128], index: 8, kind: input, shape index: {}]   ;;  %s2465_s9 = inlined_call_operand.vmem [shape: bf16[128,128], index: 9, kind: input, shape index: {}]   ;;  %s2466_s10 = inlined_call_operand.vmem [shape: f32[1,128], index: 10, kind: input, shape index: {}]   ;;  %s2467_s11 = inlined_call_operand.vmem [shape: f32[1,128], index: 11, kind: input, shape index: {}]   ;;  %s2468_s12 = inlined_call_operand.vmem [shape: f32[1,128], index: 12, kind: input, shape index: {}]   ;;  %s2469_s13 = inlined_call_operand.hbm [shape: bf16[128,384], index: 13, kind: input, shape index: {}]   ;;  %s2470_s14 = inlined_call_operand.hbm [shape: bf16[128,384], index: 14, kind: input, shape index: {}]   ;;  %s2471_s15 = inlined_call_operand.vmem [shape: f32[1,384], index: 15, kind: input, shape index: {}]   ;;  %s2472_s16 = inlined_call_operand.vmem [shape: f32[1,384], index: 16, kind: input, shape index: {}]   ;;  %s2473_s17 = inlined_call_operand.vmem [shape: f32[1,128], index: 17, kind: input, shape index: {}]   ;;  %s2474_s18 = inlined_call_operand.vmem [shape: f32[1,128], index: 18, kind: input, shape index: {}]   ;;  %s2475_s19 = inlined_call_operand.vmem [shape: f32[1,128], index: 19, kind: input, shape index: {}]   ;;  %s2476_s20 = inlined_call_operand.<no memory space> [shape: f32[1,1], index: 20, kind: input, shape index: {}]   ;;  %s2477_s21 = inlined_call_operand.vmem [shape: f32[6,8,1], index: 21, kind: output, shape index: {0}]   ;;  %s2478_s22 = inlined_call_operand.hbm [shape: f32[8,128], index: 22, kind: output, shape index: {1}]  }
   0x1   :  { %2480 = sst [smem:[#allocation13_spill]] %s2456_s0  ;;  %v28_v0 = vstv %s2476_s20 }
   0x2   :  { %2481 = sst [smem:[#allocation14_spill]] %s2457_s1  ;;  %29 = vst [vmem:[#allocation3] sm:$0x1] %v28_v0 }
   0x3   :  { %2482 = sst [smem:[#allocation15_spill]] %s2458_s2 }
   0x4   :  { %2483 = sst [smem:[#allocation16_spill]] %s2459_s3 }
   0x5   :  { %2484 = sst [smem:[#allocation17_spill]] %s2460_s4 }
   0x6   :  { %2485 = sst [smem:[#allocation18_spill]] %s2461_s5 }
   0x7   :  { %2486 = sst [smem:[#allocation19_spill]] %s2462_s6 }
   0x8   :  { %2487 = sst [smem:[#allocation20_spill]] %s2469_s13 }
   0x9   :  { %30 = vsyncpa [#allocation5], 0 }
   0xa   :  { %31 = vsyncpa [#allocation8], 0 }
   0xb   :  { %32 = vsyncpa [#allocation6], 0  ;;  %s2273_s29 = smov 0  }
   0xc LB: > { %s2488_s13 = sld [smem:[#allocation20_spill]]  ;;  %s2282_s23 = sadd.s32 4294967295, %s2147_s29   ;;  %s2147_s29 = sphi %s2273_s29, %s38_s29  }
   0xd   : > { %p1634_p0 = scmp.ge.s32.totalorder %s2147_s29, 1  ;;  %p541_p1 = scmp.lt.s32.totalorder %s2147_s29, 7 }
   0xe   : > { %p1635_p2 = scmp.ne.s32.totalorder %s2282_s23, 0  ;;  %p1990_p3 = scmp.eq.s32.totalorder %s2282_s23, 0 }
   0xf   : > { %p2288_p4 = pnand %p1634_p0, %p541_p1  ;;  %s2149_s1 = smov [#allocation4]  }
  0x10   : > { %s587_s5 = sshll.u32 %s2149_s1, 4  ;;  %s599_s25 = sshll.u32 %s2470_s14, 4  ;;  %s588_s5 = int_to_ptr.vmem [resolvable:$true] %s587_s5  ;;  %s600_s25 = int_to_ptr.hbm [resolvable:$true] %s599_s25 }
  0x11   : > { %p1983_p5 = pneg %p2288_p4  ;;  %s2150_s26 = smov [#allocation7]  }
  0x12   : > { %s585_s0 = sshll.u32 %s2488_s13, 4  ;;  %s601_s2 = sshll.u32 %s2150_s26, 4  ;;  %s586_s0 = int_to_ptr.hbm [resolvable:$true] %s585_s0  ;;  %s602_s2 = int_to_ptr.vmem [resolvable:$true] %s601_s2 }
  0x13   : > { %p1984_p6 = pnand %p1990_p3, %p1983_p5  ;;  %s2151_s27 = smov 192  }
  0x14   : > { %s2152_s3 = smov 12   ;;  %649 = sbr.rel (%p2288_p4) target bundleno = 1225 (0x4c9), region = 104 }
  0x15   : > { %1986 = dma.hbm_to_vmem [thread:$0]  (!%p1984_p6), %s586_s0, 3072, %s588_s5, [#allocation5], %s2151_s27, %s2151_s27, %s2152_s3  }
  0x16   : > { %1989 = dma.hbm_to_vmem [thread:$0]  (!%p1984_p6), %s600_s25, 3072, %s602_s2, [#allocation8], %s2151_s27, %s2151_s27, %s2152_s3  }
  0x19   : > { %2134 = dma.done.wait (%p1990_p3), [#allocation5], 3072  }
  0x1a   : > { %2136 = vsyncadd (%p1990_p3), [#allocation5], 4294964224 }
  0x1b   : > { %2138 = dma.done.wait (%p1990_p3), [#allocation8], 3072  }
  0x1c   : > { %2140 = vsyncadd (%p1990_p3), [#allocation8], 4294964224  ;;  %p719_p7 = scmp.lt.s32.totalorder %s2282_s23, 5  ;;  %s2490_s20 = sld [smem:[#allocation13_spill]] }
  0x1d   : > { %s2491_s6 = sld [smem:[#allocation14_spill]] }
  0x1e   : > { %s720_s28 = scalar_select %p719_p7, %s2282_s23, 5 }
  0x1f   : > { %734 = sbr.rel (%p1635_p2) target bundleno = 39 (0x27), region = 116  ;;  %s2492_s13 = sld [smem:[#allocation15_spill]] (!%p1635_p2) }
  0x20   : > { %s2311_s30 = sshll.u32 %s720_s28, 3 }
  0x21   : > { %s730_s27 = scalar_lea.vmem %s2477_s21, %s2311_s30 }
  0x22   : > { %s722_s1 = scalar_lea.vmem %s2490_s20, %s2311_s30 }
  0x23   : > { %s726_s25 = scalar_lea.vmem %s2491_s6, %s2311_s30 }
  0x25   : > { %v735_v1 = vld [vmem:[%s2492_s13] sm:$0xff] }
  0x26   : > { %736 = vst [vmem:[#allocation2] sm:$0xff] %v735_v1 }
  0x27 PF: > { %v737_v2 = vld [vmem:[%s722_s1] sm:$0xff]  ;;  %s2493_s20 = sld [smem:[#allocation18_spill]]  ;;  %v1922_v39 = vld [vmem:[%s2465_s9 + $0x38] sm:$0xff]  ;;  %v1921_v40 = vld [vmem:[%s2465_s9 + $0x30] sm:$0xff]  ;;  %p1994_p8 = scmp.eq.s32.totalorder %s2282_s23, 5 }
  0x28   : > { %740 = vadd.xlane.f32.xlu0 %v737_v2  ;;  %v743_v3 = vmul.f32 %v737_v2, %v737_v2  ;;  %s2494_s1 = sld [smem:[#allocation16_spill]]  ;;  %954 = vmatpush.bf16.msra.mxu1 %v1922_v39  ;;  %v1920_v41 = vld [vmem:[%s2465_s9 + $0x28] sm:$0xff]  ;;  %v1919_v42 = vld [vmem:[%s2465_s9 + $0x20] sm:$0xff]  ;;  %v1918_v43 = vld [vmem:[%s2465_s9 + $0x18] sm:$0xff] }
  0x29   : > { %s2495_s28 = sld [smem:[#allocation17_spill]]  ;;  %v1917_v44 = vld [vmem:[%s2465_s9 + $0x10] sm:$0xff]  ;;  %v1916_v45 = vld [vmem:[%s2465_s9 + $0x8] sm:$0xff]  ;;  %v1915_v47 = vld [vmem:[%s2465_s9] sm:$0xff] }
  0x2a   : > { %s2496_s5 = sld [smem:[#allocation19_spill]]  ;;  %v2014_v61 = vld [vmem:[%s2463_s7] ss:$0 sm:$0xff]  ;;  %v1747_v39 = vld [vmem:[#allocation4 + $0x48] sm:$0xf] }
  0x2b   : > { %v2015_v0 = vld [vmem:[%s2464_s8] ss:$0 sm:$0xff] }
  0x2c   : > { %955 = vmatpush.bf16.msra.mxu1 %v1921_v40  ;;  %v1933_v40 = vld [vmem:[#allocation4 + $0x50] sm:$0xf0] }
  0x2d   : > { %v1914_v4 = vld [vmem:[%s2493_s20 + $0x38] sm:$0xff]  ;;  %v1913_v5 = vld [vmem:[%s2493_s20 + $0x30] sm:$0xff]  ;;  %v1912_v6 = vld [vmem:[%s2493_s20 + $0x28] sm:$0xff] }
  0x2e   : > { %839 = vmatpush.bf16.msra.mxu0 %v1914_v4  ;;  %v1911_v7 = vld [vmem:[%s2493_s20 + $0x20] sm:$0xff]  ;;  %v1910_v8 = vld [vmem:[%s2493_s20 + $0x18] sm:$0xff]  ;;  %v1909_v9 = vld [vmem:[%s2493_s20 + $0x10] sm:$0xff] }
  0x2f   : > { %v1908_v10 = vld [vmem:[%s2493_s20 + $0x8] sm:$0xff]  ;;  %v1907_v12 = vld [vmem:[%s2493_s20] sm:$0xff] }
  0x30   : > { %744 = vadd.xlane.f32.xlu0 %v743_v3  ;;  %v2011_v26 = vld [vmem:[%s2494_s1] ss:$0 sm:$0xff]  ;;  %956 = vmatpush.bf16.msra.mxu1 %v1920_v41  ;;  %v1932_v41 = vld [vmem:[#allocation4 + $0x4c] sm:$0xf]  ;;  %s1534_s1 = sshll.u32 %s2478_s22, 4  ;;  %s1535_s1 = int_to_ptr.hbm [resolvable:$true] %s1534_s1 }
  0x31   : > { %v2012_v29 = vld [vmem:[%s2495_s28] ss:$0 sm:$0xff] }
  0x32   : > { %840 = vmatpush.bf16.msra.mxu0 %v1913_v5  ;;  %v2013_v33 = vld [vmem:[%s2496_s5] ss:$0 sm:$0xff]  ;;  %v1795_v5 = vld [vmem:[#allocation4 + $0xa8] sm:$0xf]  ;;  %s2154_s5 = smov [#allocation9]  }
  0x33   : > { %v1001_v4 = vld [vmem:[%s726_s25] sm:$0xff]  ;;  %s1532_s24 = sshll.u32 %s2154_s5, 4  ;;  %s1533_s24 = int_to_ptr.vmem [resolvable:$true] %s1532_s24 }
  0x34   : > { %957 = vmatpush.bf16.msra.mxu1 %v1919_v42  ;;  %v1748_v42 = vor.u32 %v1933_v40, %v1747_v39  ;;  %v1843_v39 = vld [vmem:[#allocation7 + $0x48] sm:$0xf]  ;;  %v1957_v40 = vld [vmem:[#allocation7 + $0x50] sm:$0xf0] }
  0x36   : > { %841 = vmatpush.bf16.msra.mxu0 %v1912_v6  ;;  %v1945_v6 = vld [vmem:[#allocation4 + $0xb0] sm:$0xf0] }
  0x38   : > { %958 = vmatpush.bf16.msra.mxu1 %v1918_v43  ;;  %v1749_v43 = vld [vmem:[#allocation4 + $0x54] sm:$0xf0] }
  0x3a   : > { %842 = vmatpush.bf16.msra.mxu0 %v1911_v7  ;;  %v2153_v7 = vmov 0  }
  0x3b   : > { %2010 = vset.pattern.permute.xlu0 %v2153_v7 }
  0x3c   : > { %959 = vmatpush.bf16.msra.mxu1 %v1917_v44  ;;  %v1791_v44 = vld [vmem:[#allocation4 + $0x98] sm:$0xf] }
  0x3e   : > { %843 = vmatpush.bf16.msra.mxu0 %v1910_v8  ;;  %v1796_v8 = vor.u32 %v1945_v6, %v1795_v5  ;;  %v1937_v5 = vld [vmem:[#allocation4 + $0x70] sm:$0xf0] }
  0x40   : > { %960 = vmatpush.bf16.msra.mxu1 %v1916_v45  ;;  %1177 = vmatpush.bf16.msra.mxu2 %v1796_v8  ;;  %v1943_v45 = vld [vmem:[#allocation4 + $0xa0] sm:$0xf0]  ;;  %v1867_v8 = vld [vmem:[#allocation7 + $0x78] sm:$0xf] }
  0x42   : > { %844 = vmatpush.bf16.msra.mxu0 %v1909_v9  ;;  %v1944_v9 = vld [vmem:[#allocation4 + $0xac] sm:$0xf] }
  0x44   : > { %961 = vmatpush.bf16.msra.mxu1 %v1915_v47  ;;  %1004 = vperm.xlu0 %2010, %v1001_v4   ;;  %v1792_v47 = vor.u32 %v1943_v45, %v1791_v44  ;;  %v1767_v4 = vld [vmem:[#allocation4 + $0x68] sm:$0xf]  ;;  %v1962_v44 = vld [vmem:[#allocation7 + $0x7c] sm:$0xf] }
  0x45   : > { %v1768_v7 = vor.u32 %v1937_v5, %v1767_v4  ;;  %v1956_v5 = vld [vmem:[#allocation7 + $0x4c] sm:$0xf] }
  0x46   : > { %845 = vmatpush.bf16.msra.mxu0 %v1908_v10  ;;  %v1797_v10 = vld [vmem:[#allocation4 + $0xb4] sm:$0xf0] }
  0x4a   : > { %846 = vmatpush.bf16.msra.mxu0 %v1907_v12  ;;  %v2016_v12 = vld [vmem:[%s2466_s10] ss:$0 sm:$0xff] }
  0x9b   : > { %v741_v11 = vpop.xlane.xlu0 %740 }
  0x9c   : > { %v742_v13 = vmul.f32 0.020833334, %v741_v11  ;;  %v1800_v11 = vor.u32 %v1944_v9, %v1797_v10  ;;  %v1963_v9 = vld [vmem:[#allocation7 + $0x80] sm:$0xf0] }
  0x9d   : > { %v1868_v10 = vor.u32 %v1963_v9, %v1867_v8 }
  0x9e   : > { %v747_v15 = vmul.f32 %v742_v13, %v742_v13  ;;  %v749_v25 = vsub.f32 %v737_v2, %v742_v13  ;;  %1190 = vmatpush.bf16.msra.mxu3 %v1800_v11  ;;  %v1711_v11 = vld [vmem:[#allocation4] sm:$0xf] }
  0xa3   : > { %v745_v14 = vpop.xlane.xlu0 %744 }
  0xa4   : > { %v746_v16 = vmul.f32 0.020833334, %v745_v14 }
  0xa6   : > { %v748_v17 = vsub.f32 %v746_v16, %v747_v15 }
  0xa8   : > { %v750_v18 = vadd.f32 1e-05, %v748_v17 }
  0xaa   : > { %2023 = vrsqrt.f32 %v750_v18  ;;  %vm757_vm1 = vweird.f32 %v750_v18 }
  0xb0   : > { %v2024_v19 = vpop.eup %2023 }
  0xb1   : > { %v752_v20 = vmul.f32 %v2024_v19, %v750_v18  ;;  %vm758_vm0 = vweird.f32 %v2024_v19  ;;  %v1783_v18 = vld [vmem:[#allocation4 + $0x90] sm:$0xf] }
  0xb2   : > { %vm759_vm2 = vmor %vm757_vm1, %vm758_vm0 }
  0xb3   : > { %v753_v21 = vmul.f32 %v2024_v19, %v752_v20  ;;  %v1941_v20 = vld [vmem:[#allocation4 + $0x94] sm:$0xf] }
  0xb5   : > { %v754_v22 = vmul.f32 0.5, %v753_v21 }
  0xb7   : > { %v755_v23 = vsub.f32 1.5, %v754_v22  ;;  %v1785_v22 = vld [vmem:[#allocation4 + $0x9c] sm:$0xf0] }
  0xb9   : > { %v756_v24 = vmul.f32 %v2024_v19, %v755_v23  ;;  %v1788_v23 = vor.u32 %v1941_v20, %v1785_v22  ;;  %v1893_v22 = vld [vmem:[#allocation7 + $0xb4] sm:$0xf0] }
  0xbb   : > { %v760_v27 = vsel %vm759_vm2, %v2024_v19, %v756_v24  ;;  %v1942_v19 = vld [vmem:[#allocation4 + $0x98] sm:$0xf0]  ;;  %1191 = vmatpush.bf16.msra.mxu3 %v1788_v23  ;;  %v1771_v24 = vld [vmem:[#allocation4 + $0x78] sm:$0xf]  ;;  %v1899_v23 = vld [vmem:[#allocation7 + $0xb0] sm:$0xf] }
  0xbc   : > { %v761_v28 = vmul.f32 %v760_v27, %v749_v25  ;;  %v1784_v21 = vor.u32 %v1942_v19, %v1783_v18  ;;  %v1939_v25 = vld [vmem:[#allocation4 + $0x80] sm:$0xf0]  ;;  %v1934_v18 = vld [vmem:[#allocation4 + $0x58] sm:$0xf0] }
  0xbd   : > { %v1772_v27 = vor.u32 %v1939_v25, %v1771_v24  ;;  %v1970_v25 = vld [vmem:[#allocation7 + $0xb8] sm:$0xf0] }
  0xbe   : > { %v765_v30 = vmul.f32 %v2011_v26, %v761_v28  ;;  %1178 = vmatpush.bf16.msra.mxu2 %v1784_v21  ;;  %v1938_v26 = vld [vmem:[#allocation4 + $0x7c] sm:$0xf]  ;;  %v1773_v28 = vld [vmem:[#allocation4 + $0x84] sm:$0xf0]  ;;  %v1968_v21 = vld [vmem:[#allocation7 + $0xac] sm:$0xf] }
  0xbf   : > { %v1896_v24 = vor.u32 %v1968_v21, %v1893_v22  ;;  %v1833_v22 = vld [vmem:[#allocation7 + $0x3c] sm:$0xf0] }
  0xc0   : > { %v769_v31 = vadd.f32 %v2012_v29, %v765_v30  ;;  %v1776_v29 = vor.u32 %v1938_v26, %v1773_v28  ;;  %v1759_v30 = vld [vmem:[#allocation4 + $0x60] sm:$0xf]  ;;  %v1900_v28 = vor.u32 %v1970_v25, %v1899_v23  ;;  %v1839_v23 = vld [vmem:[#allocation7 + $0x38] sm:$0xf] }
  0xc1   : > { %v1855_v26 = vld [vmem:[#allocation7 + $0x60] sm:$0xf] }
  0xc2   : > { %v786_v32 = vpack.c.bf16 %v769_v31, %v769_v31  ;;  %1179 = vmatpush.bf16.msra.mxu2 %v1772_v27  ;;  %1192 = vmatpush.bf16.msra.mxu3 %v1776_v29  ;;  %v1936_v31 = vld [vmem:[#allocation4 + $0x68] sm:$0xf0] }
  0xc3   : > { %v1960_v27 = vld [vmem:[#allocation7 + $0x68] sm:$0xf0] }
  0xc4   : > { %847 = vmatmul.bf16.vlgmr.msra.gmra.mxu0 %v786_v32  ;;  %v1935_v32 = vld [vmem:[#allocation4 + $0x64] sm:$0xf]  ;;  %v1856_v29 = vor.u32 %v1960_v27, %v1855_v26  ;;  %v1950_v27 = vld [vmem:[#allocation7 + $0x1c] sm:$0xf] }
 0x141   : > { %v848_v34 = vpop.f32.mrf.mxu0 }
 0x142   : > { %v849_v35 = vadd.f32 %v2013_v33, %v848_v34  ;;  %v1760_v33 = vor.u32 %v1936_v31, %v1759_v30  ;;  %v1761_v34 = vld [vmem:[#allocation4 + $0x6c] sm:$0xf0]  ;;  %v1743_v30 = vld [vmem:[#allocation4 + $0x38] sm:$0xf]  ;;  %v1931_v31 = vld [vmem:[#allocation4 + $0x40] sm:$0xf0] }
 0x144   : > { %v852_v36 = vmax.f32 %v849_v35, 0.0  ;;  %v1803_v35 = vld [vmem:[#allocation4 + $0xb0] sm:$0xf]  ;;  %1180 = vmatpush.bf16.msra.mxu2 %v1760_v33  ;;  %v1744_v33 = vor.u32 %v1931_v31, %v1743_v30  ;;  %v1827_v31 = vld [vmem:[#allocation7 + $0x20] sm:$0xf] }
 0x146   : > { %855 = vadd.xlane.f32.xlu1 %v852_v36  ;;  %v858_v38 = vmul.f32 %v852_v36, %v852_v36 }
 0x148   : > { %1181 = vmatpush.bf16.msra.mxu2 %v1748_v42  ;;  %v1731_v42 = vld [vmem:[#allocation4 + $0x20] sm:$0xf] }
 0x149   : > { %v850_v37 = vpop.f32.mrf.mxu0 }
 0x14a   : > { %v1764_v37 = vor.u32 %v1935_v32, %v1761_v34  ;;  %v1965_v32 = vld [vmem:[#allocation7 + $0x94] sm:$0xf]  ;;  %v1881_v34 = vld [vmem:[#allocation7 + $0x9c] sm:$0xf0] }
 0x14c   : > { %1193 = vmatpush.bf16.msra.mxu3 %v1764_v37  ;;  %v1884_v37 = vor.u32 %v1965_v32, %v1881_v34  ;;  %v1952_v32 = vld [vmem:[#allocation7 + $0x28] sm:$0xf0] }
 0x14d   : > { %v1828_v34 = vor.u32 %v1952_v32, %v1827_v31 }
 0x14e   : > { %859 = vadd.xlane.f32.xlu1 %v858_v38 }
 0x1b9   : > { %v856_v46 = vpop.xlane.xlu1 %855 }
 0x1ba   : > { %v857_v48 = vmul.f32 0.015625, %v856_v46  ;;  %v1752_v46 = vor.u32 %v1932_v41, %v1749_v43  ;;  %v1844_v41 = vor.u32 %v1957_v40, %v1843_v39  ;;  %v1928_v43 = vld [vmem:[#allocation4 + $0x28] sm:$0xf0] }
 0x1bb   : > { %v1732_v45 = vor.u32 %v1928_v43, %v1731_v42 }
 0x1bc   : > { %v862_v50 = vmul.f32 %v857_v48, %v857_v48  ;;  %v864_v60 = vsub.f32 %v852_v36, %v857_v48  ;;  %v1946_v36 = vld [vmem:[#allocation4 + $0xb8] sm:$0xf0]  ;;  %v1891_v48 = vld [vmem:[#allocation7 + $0xa8] sm:$0xf]  ;;  %1194 = vmatpush.bf16.msra.mxu3 %v1752_v46 }
 0x1bd   : > { %v1804_v38 = vor.u32 %v1946_v36, %v1803_v35  ;;  %v1887_v35 = vld [vmem:[#allocation7 + $0x98] sm:$0xf]  ;;  %v1967_v36 = vld [vmem:[#allocation7 + $0xa0] sm:$0xf0]  ;;  %v1869_v46 = vld [vmem:[#allocation7 + $0x84] sm:$0xf0] }
 0x1bf   : > { %1203 = vmatpush.bf16.msrb.mxu0 %v1804_v38  ;;  %v1888_v38 = vor.u32 %v1967_v36, %v1887_v35  ;;  %v1947_v35 = vld [vmem:[#allocation7 + $0x4] sm:$0xf]  ;;  %v1809_v36 = vld [vmem:[#allocation7 + $0xc] sm:$0xf0] }
 0x1c0   : > { %v1812_v39 = vor.u32 %v1947_v35, %v1809_v36 }
 0x1c1   : > { %v860_v49 = vpop.xlane.xlu1 %859 }
 0x1c2   : > { %v861_v51 = vmul.f32 0.015625, %v860_v49  ;;  %v1969_v49 = vld [vmem:[#allocation7 + $0xb0] sm:$0xf0] }
 0x1c3   : > { %1204 = vmatpush.bf16.msrb.mxu0 %v1792_v47  ;;  %v1875_v47 = vld [vmem:[#allocation7 + $0x80] sm:$0xf] }
 0x1c4   : > { %v863_v52 = vsub.f32 %v861_v51, %v862_v50  ;;  %v1892_v50 = vor.u32 %v1969_v49, %v1891_v48  ;;  %v1735_v51 = vld [vmem:[#allocation4 + $0x30] sm:$0xf]  ;;  %v1964_v48 = vld [vmem:[#allocation7 + $0x88] sm:$0xf0] }
 0x1c6   : > { %v865_v53 = vadd.f32 1e-05, %v863_v52  ;;  %v1930_v52 = vld [vmem:[#allocation4 + $0x38] sm:$0xf0]  ;;  %1385 = vmatpush.bf16.msrb.mxu1 %v1892_v50  ;;  %v1872_v50 = vor.u32 %v1962_v44, %v1869_v46 }
 0x1c8   : > { %2025 = vrsqrt.f32 %v865_v53  ;;  %vm872_vm4 = vweird.f32 %v865_v53 }
 0x1ce   : > { %v2026_v54 = vpop.eup %2025 }
 0x1cf   : > { %v867_v55 = vmul.f32 %v2026_v54, %v865_v53  ;;  %vm873_vm3 = vweird.f32 %v2026_v54  ;;  %v1929_v53 = vld [vmem:[#allocation4 + $0x34] sm:$0xf] }
 0x1d0   : > { %vm874_vm5 = vmor %vm872_vm4, %vm873_vm3  ;;  %vm1517_vm4 = vcmask 7168  }
 0x1d1   : > { %v868_v56 = vmul.f32 %v2026_v54, %v867_v55  ;;  %v1737_v55 = vld [vmem:[#allocation4 + $0x3c] sm:$0xf0] }
 0x1d3   : > { %v869_v57 = vmul.f32 0.5, %v868_v56  ;;  %v1779_v56 = vld [vmem:[#allocation4 + $0x80] sm:$0xf] }
 0x1d5   : > { %v870_v58 = vsub.f32 1.5, %v869_v57  ;;  %v1940_v57 = vld [vmem:[#allocation4 + $0x88] sm:$0xf0] }
 0x1d7   : > { %v871_v59 = vmul.f32 %v2026_v54, %v870_v58  ;;  %v1740_v58 = vor.u32 %v1929_v53, %v1737_v55  ;;  %v1954_v53 = vld [vmem:[#allocation7 + $0x38] sm:$0xf0] }
 0x1d9   : > { %v875_v62 = vsel %vm874_vm5, %v2026_v54, %v871_v59  ;;  %v1736_v54 = vor.u32 %v1930_v52, %v1735_v51  ;;  %v1780_v59 = vor.u32 %v1940_v57, %v1779_v56  ;;  %1195 = vmatpush.bf16.msra.mxu3 %v1740_v58  ;;  %v1876_v51 = vor.u32 %v1964_v48, %v1875_v47  ;;  %v1831_v52 = vld [vmem:[#allocation7 + $0x30] sm:$0xf]  ;;  %v1925_v56 = vld [vmem:[#allocation4 + $0x10] sm:$0xf0]  ;;  %v1959_v57 = vld [vmem:[#allocation7 + $0x64] sm:$0xf] }
 0x1da   : > { %v876_v63 = vmul.f32 %v875_v62, %v864_v60  ;;  %v1879_v60 = vld [vmem:[#allocation7 + $0x90] sm:$0xf]  ;;  %v1832_v55 = vor.u32 %v1954_v53, %v1831_v52  ;;  %v2017_v48 = vld [vmem:[%s2467_s11] ss:$0 sm:$0xff] }
 0x1db   : > { %1182 = vmatpush.bf16.msra.mxu2 %v1736_v54  ;;  %1205 = vmatpush.bf16.msrb.mxu0 %v1780_v59  ;;  %v1719_v54 = vld [vmem:[#allocation4 + $0x8] sm:$0xf]  ;;  %v1857_v59 = vld [vmem:[#allocation7 + $0x6c] sm:$0xf0] }
 0x1dc   : > { %v880_v1 = vmul.f32 %v2014_v61, %v876_v63  ;;  %v1966_v61 = vld [vmem:[#allocation7 + $0x98] sm:$0xf0]  ;;  %v1723_v63 = vld [vmem:[#allocation4 + $0x18] sm:$0xf]  ;;  %v1720_v58 = vor.u32 %v1925_v56, %v1719_v54 }
 0x1dd   : > { %v1880_v62 = vor.u32 %v1966_v61, %v1879_v60  ;;  %v1863_v60 = vld [vmem:[#allocation7 + $0x68] sm:$0xf]  ;;  %v1961_v61 = vld [vmem:[#allocation7 + $0x70] sm:$0xf0] }
 0x1de   : > { %v884_v2 = vadd.f32 %v2015_v0, %v880_v1  ;;  %v1927_v0 = vld [vmem:[#allocation4 + $0x20] sm:$0xf0]  ;;  %v1926_v1 = vld [vmem:[#allocation4 + $0x1c] sm:$0xf]  ;;  %v1249_v56 = vld [vmem:[%s2472_s16] sm:$0x7] }
 0x1df   : > { %1386 = vmatpush.bf16.msrb.mxu1 %v1880_v62  ;;  %1206 = vmatpush.bf16.msrb.mxu0 %v1768_v7  ;;  %v1860_v62 = vor.u32 %v1959_v57, %v1857_v59  ;;  %v1851_v7 = vld [vmem:[#allocation7 + $0x50] sm:$0xf]  ;;  %v1041_v59 = vld [vmem:[%s2471_s15] sm:$0x7] }
 0x1e0   : > { %v901_v3 = vpack.c.bf16 %v884_v2, %v884_v2  ;;  %v1724_v2 = vor.u32 %v1927_v0, %v1723_v63  ;;  %v1819_v63 = vld [vmem:[#allocation7 + $0x18] sm:$0xf]  ;;  %v1951_v0 = vld [vmem:[#allocation7 + $0x20] sm:$0xf0] }
 0x1e2   : > { %962 = vmatmul.bf16.vlgmr.msra.gmra.mxu1 %v901_v3  ;;  %v1725_v3 = vld [vmem:[#allocation4 + $0x24] sm:$0xf0]  ;;  %1183 = vmatpush.bf16.msra.mxu2 %v1724_v2  ;;  %v1820_v2 = vor.u32 %v1951_v0, %v1819_v63 }
 0x1e3   : > { %v1728_v6 = vor.u32 %v1926_v1, %v1725_v3  ;;  %1387 = vmatpush.bf16.msrb.mxu1 %v1868_v10  ;;  %v1864_v1 = vor.u32 %v1961_v61, %v1863_v60  ;;  %v1043_v60 = vperm.slane %v1041_v59, 0 }
 0x1e5   : > { %1196 = vmatpush.bf16.msra.mxu3 %v1728_v6  ;;  %v1845_v6 = vld [vmem:[#allocation7 + $0x54] sm:$0xf0] }
 0x1e6   : > { %v1848_v10 = vor.u32 %v1956_v5, %v1845_v6 }
 0x1e7   : > { %1388 = vmatpush.bf16.msrb.mxu1 %v1856_v29 }
 0x1eb   : > { %1389 = vmatpush.bf16.msrb.mxu1 %v1844_v41 }
 0x1ef   : > { %1390 = vmatpush.bf16.msrb.mxu1 %v1832_v55 }
 0x1f3   : > { %1391 = vmatpush.bf16.msrb.mxu1 %v1820_v2 }
 0x25f   : > { %v963_v13 = vpop.f32.mrf.mxu1 }
 0x260   : > { %v964_v14 = vadd.f32 %v2016_v12, %v963_v13  ;;  %v1924_v12 = vld [vmem:[#allocation4 + $0x8] sm:$0xf0]  ;;  %v1923_v13 = vld [vmem:[#allocation4 + $0x4] sm:$0xf] }
 0x262   : > { %v2401_v15 = vmax.f32 %v964_v14, 0.0  ;;  %v1712_v14 = vor.u32 %v1924_v12, %v1711_v11  ;;  %v1958_v11 = vld [vmem:[#allocation7 + $0x58] sm:$0xf0]  ;;  %v1807_v12 = vld [vmem:[#allocation7] sm:$0xf] }
 0x264   : > { %970 = vadd.xlane.f32.xlu2 %v2401_v15  ;;  %v973_v17 = vmul.f32 %v2401_v15, %v2401_v15  ;;  %1184 = vmatpush.bf16.msra.mxu2 %v1712_v14  ;;  %v1005_v14 = vpop.permute.xlu0 %1004 }
 0x267   : > { %v965_v16 = vpop.f32.mrf.mxu1 }
 0x268   : > { %v1713_v16 = vld [vmem:[#allocation4 + $0xc] sm:$0xf0]  ;;  %1398 = vmatpush.bf16.msrb.mxu2 %v1896_v24  ;;  %v1955_v24 = vld [vmem:[#allocation7 + $0x40] sm:$0xf0] }
 0x269   : > { %v1716_v19 = vor.u32 %v1923_v13, %v1713_v16  ;;  %v1000_v13 = vld [vmem:[#allocation2] sm:$0xff]  ;;  %v1852_v16 = vor.u32 %v1958_v11, %v1851_v7  ;;  %v1840_v26 = vor.u32 %v1955_v24, %v1839_v23  ;;  %v1044_v7 = vperm.slane %v1041_v59, 1 }
 0x26b   : > { %1197 = vmatpush.bf16.msra.mxu3 %v1716_v19 }
 0x26c   : > { %974 = vadd.xlane.f32.xlu2 %v973_v17  ;;  %v1755_v17 = vld [vmem:[#allocation4 + $0x50] sm:$0xf]  ;;  %1399 = vmatpush.bf16.msrb.mxu2 %v1884_v37  ;;  %v1815_v37 = vld [vmem:[#allocation7 + $0x8] sm:$0xf] }
 0x26d   : > { %v1756_v20 = vor.u32 %v1934_v18, %v1755_v17  ;;  %v1948_v17 = vld [vmem:[#allocation7 + $0x8] sm:$0xf0]  ;;  %v1953_v18 = vld [vmem:[#allocation7 + $0x34] sm:$0xf] }
 0x26e   : > { %v1808_v21 = vor.u32 %v1948_v17, %v1807_v12  ;;  %v1836_v25 = vor.u32 %v1953_v18, %v1833_v22 }
 0x26f   : > { %1207 = vmatpush.bf16.msrb.mxu0 %v1756_v20  ;;  %1411 = vmatpush.bf16.msrb.mxu3 %v1900_v28  ;;  %v2410_v20 = vmul.f32 %v1005_v14, %v1000_v13  ;;  %v1821_v28 = vld [vmem:[#allocation7 + $0x24] sm:$0xf0] }
 0x270   : > { %1400 = vmatpush.bf16.msrb.mxu2 %v1872_v50  ;;  %1392 = vmatpush.bf16.msrb.mxu1 %v1808_v21 }
 0x271   : > { %v1248_v30 = vpack.c.bf16 %v2410_v20, %v2410_v20 }
 0x273   : > { %1208 = vmatpush.bf16.msrb.mxu0 %v1744_v33  ;;  %1412 = vmatpush.bf16.msrb.mxu3 %v1888_v38  ;;  %v1824_v33 = vor.u32 %v1950_v27, %v1821_v28  ;;  %v1949_v38 = vld [vmem:[#allocation7 + $0x10] sm:$0xf0] }
 0x274   : > { %1401 = vmatpush.bf16.msrb.mxu2 %v1860_v62  ;;  %1393 = vmatmul.bf16.vlgmr.msrb.gmra.mxu1 %v1248_v30  ;;  %v1816_v40 = vor.u32 %v1949_v38, %v1815_v37 }
 0x277   : > { %1209 = vmatpush.bf16.msrb.mxu0 %v1732_v45  ;;  %1413 = vmatpush.bf16.msrb.mxu3 %v1876_v51  ;;  %v2018_v51 = vld [vmem:[%s2468_s12] ss:$0 sm:$0xff] }
 0x278   : > { %1402 = vmatpush.bf16.msrb.mxu2 %v1848_v10 }
 0x27b   : > { %1210 = vmatpush.bf16.msrb.mxu0 %v1720_v58  ;;  %1414 = vmatpush.bf16.msrb.mxu3 %v1864_v1  ;;  %v1251_v58 = vperm.slane %v1249_v56, 0 }
 0x27c   : > { %1403 = vmatpush.bf16.msrb.mxu2 %v1836_v25 }
 0x27f   : > { %1415 = vmatpush.bf16.msrb.mxu3 %v1852_v16 }
 0x280   : > { %1404 = vmatpush.bf16.msrb.mxu2 %v1824_v33  ;;  %v1045_v33 = vperm.slane %v1041_v59, 2 }
 0x283   : > { %1416 = vmatpush.bf16.msrb.mxu3 %v1840_v26 }
 0x284   : > { %1405 = vmatpush.bf16.msrb.mxu2 %v1812_v39 }
 0x287   : > { %1417 = vmatpush.bf16.msrb.mxu3 %v1828_v34 }
 0x28b   : > { %1418 = vmatpush.bf16.msrb.mxu3 %v1816_v40 }
 0x2d7   : > { %v971_v49 = vpop.xlane.xlu2 %970 }
 0x2d8   : > { %v2406_v3 = vmul.f32 0.015625, %v971_v49 }
 0x2da   : > { %v977_v8 = vmul.f32 %v2406_v3, %v2406_v3  ;;  %v979_v47 = vsub.f32 %v2401_v15, %v2406_v3 }
 0x2df   : > { %v975_v4 = vpop.xlane.xlu2 %974 }
 0x2e0   : > { %v976_v9 = vmul.f32 0.015625, %v975_v4 }
 0x2e2   : > { %v978_v19 = vsub.f32 %v976_v9, %v977_v8  ;;  %v1252_v8 = vperm.slane %v1249_v56, 1 }
 0x2e4   : > { %v980_v29 = vadd.f32 1e-05, %v978_v19 }
 0x2e6   : > { %2027 = vrsqrt.f32 %v980_v29  ;;  %vm987_vm7 = vweird.f32 %v980_v29 }
 0x2ec   : > { %v2028_v41 = vpop.eup %2027 }
 0x2ed   : > { %v982_v42 = vmul.f32 %v2028_v41, %v980_v29  ;;  %vm988_vm6 = vweird.f32 %v2028_v41  ;;  %v1253_v29 = vperm.slane %v1249_v56, 2 }
 0x2ee   : > { %vm989_vm8 = vmor %vm987_vm7, %vm988_vm6 }
 0x2ef   : > { %v983_v43 = vmul.f32 %v2028_v41, %v982_v42 }
 0x2f1   : > { %v984_v44 = vmul.f32 0.5, %v983_v43  ;;  %v1394_v15 = vpop.f32.mrf.mxu1 }
 0x2f2   : > { %v1395_v61 = vadd.f32 %v1394_v15, %v1251_v58 }
 0x2f3   : > { %v985_v45 = vsub.f32 1.5, %v984_v44 }
 0x2f5   : > { %v986_v46 = vmul.f32 %v2028_v41, %v985_v45 }
 0x2f7   : > { %v990_v49 = vsel %vm989_vm8, %v2028_v41, %v986_v46 }
 0x2f8   : > { %v991_v50 = vmul.f32 %v990_v49, %v979_v47 }
 0x2f9   : > { %v1396_v55 = vpop.f32.mrf.mxu1 }
 0x2fa   : > { %v995_v52 = vmul.f32 %v2017_v48, %v991_v50 }
 0x2fc   : > { %v999_v53 = vadd.f32 %v2018_v51, %v995_v52 }
 0x2fe   : > { %v1040_v54 = vpack.c.bf16 %v999_v53, %v999_v53 }
 0x300   : > { %1185 = vmatmul.bf16.vlgmr.msra.gmra.mxu2 %v1040_v54  ;;  %1198 = vmatmul.bf16.vlgmr.msra.gmra.mxu3 %v1040_v54 }
 0x301   : > { %1211 = vmatmul.bf16.vlgmr.msrb.gmra.mxu0 %v1040_v54 }
 0x310   : > { %1406 = vmatmul.bf16.vlgmr.msrb.gmra.mxu2 %v1248_v30  ;;  %1419 = vmatmul.bf16.vlgmr.msrb.gmra.mxu3 %v1248_v30 }
 0x37e   : > { %v1212_v57 = vpop.f32.mrf.mxu0 }
 0x37f   : > { %v1213_v37 = vadd.f32 %v1212_v57, %v1045_v33 }
 0x383   : > { %v1186_v62 = vpop.f32.mrf.mxu2  ;;  %v1199_v63 = vpop.f32.mrf.mxu3 }
 0x384   : > { %v1187_v0 = vadd.f32 %v1186_v62, %v1043_v60  ;;  %v1200_v12 = vadd.f32 %v1199_v63, %v1044_v7  ;;  %v2021_v7 = vld [vmem:[%s2475_s19] ss:$0 sm:$0xff] }
 0x386   : > { %v1424_v1 = vadd.f32 %v1395_v61, %v1187_v0  ;;  %v1214_v2 = vpop.f32.mrf.mxu0 }
 0x387   : > { %v2019_v2 = vld [vmem:[%s2473_s17] ss:$0 sm:$0xff] }
 0x388   : > { %v1901_v3 = vmul.f32 -1.442695, %v1424_v1 }
 0x38a   : > { %2029 = vpow2.f32 %v1901_v3 }
 0x38b   : > { %v1188_v4 = vpop.f32.mrf.mxu2  ;;  %v1201_v5 = vpop.f32.mrf.mxu3 }
 0x38c   : > { %v2020_v5 = vld [vmem:[%s2474_s18] ss:$0 sm:$0xff] }
 0x390   : > { %v2030_v6 = vpop.eup %2029 }
 0x391   : > { %v1428_v9 = vadd.f32 1.0, %v2030_v6 }
 0x393   : > { %2031 = vrcp.f32 %v1428_v9  ;;  %v1407_v10 = vpop.f32.mrf.mxu2  ;;  %v1420_v11 = vpop.f32.mrf.mxu3  ;;  %v1440_v24 = vand.u32 2147483648, %v1428_v9  ;;  %v1438_v25 = vand.u32 2147483647, %v1428_v9  ;;  %vm1434_vm10 = vweird.f32 %v1428_v9 }
 0x394   : > { %v1408_v13 = vadd.f32 %v1407_v10, %v1252_v8  ;;  %v1421_v34 = vadd.f32 %v1420_v11, %v1253_v29  ;;  %v2022_v10 = vld [vmem:[#allocation3] ss:$0 sm:$0xff] }
 0x395   : > { %v1441_v31 = vor.u32 1.1754944e-38, %v1440_v24  ;;  %vm1439_vm12 = vcmp.eq.f32.partialorder %v1438_v25, 8.507059e+37 }
 0x396   : > { %v1444_v14 = vadd.f32 %v1408_v13, %v1200_v12 }
 0x398   : > { %v1902_v16 = vmul.f32 -1.442695, %v1444_v14 }
 0x399   : > { %v2032_v17 = vpop.eup %2031 }
 0x39a   : > { %2033 = vpow2.f32 %v1902_v16  ;;  %v1430_v18 = vmul.f32 %v2032_v17, %v1428_v9  ;;  %vm1435_vm9 = vweird.f32 %v2032_v17 }
 0x39b   : > { %v1409_v19 = vpop.f32.mrf.mxu2  ;;  %v1422_v21 = vpop.f32.mrf.mxu3  ;;  %vm1436_vm11 = vmor %vm1434_vm10, %vm1435_vm9 }
 0x39c   : > { %v1431_v22 = vsub.f32 1.0, %v1430_v18 }
 0x39e   : > { %v1432_v23 = vmul.f32 %v2032_v17, %v1431_v22 }
 0x3a0   : > { %v2034_v26 = vpop.eup %2033  ;;  %v1433_v27 = vadd.f32 %v2032_v17, %v1432_v23 }
 0x3a1   : > { %v1448_v28 = vadd.f32 1.0, %v2034_v26 }
 0x3a2   : > { %v1437_v30 = vsel %vm1436_vm11, %v2032_v17, %v1433_v27 }
 0x3a3   : > { %2035 = vrcp.f32 %v1448_v28  ;;  %v1442_v32 = vsel %vm1439_vm12, %v1441_v31, %v1437_v30  ;;  %v1460_v41 = vand.u32 2147483648, %v1448_v28  ;;  %v1458_v43 = vand.u32 2147483647, %v1448_v28 }
 0x3a4   : > { %v1464_v35 = vmul.f32 %v1442_v32, %v1421_v34  ;;  %vm1454_vm14 = vweird.f32 %v1448_v28 }
 0x3a5   : > { %v1461_v45 = vor.u32 1.1754944e-38, %v1460_v41  ;;  %vm1459_vm0 = vcmp.eq.f32.partialorder %v1458_v43, 8.507059e+37 }
 0x3a6   : > { %v1465_v39 = vadd.f32 %v1464_v35, %v1213_v37 }
 0x3a8   : > { %2037 = vtanh.f32 %v1465_v39 }
 0x3a9   : > { %v2036_v36 = vpop.eup %2035 }
 0x3aa   : > { %v1450_v38 = vmul.f32 %v2036_v36, %v1448_v28  ;;  %vm1455_vm13 = vweird.f32 %v2036_v36 }
 0x3ab   : > { %vm1456_vm15 = vmor %vm1454_vm14, %vm1455_vm13 }
 0x3ac   : > { %v1451_v40 = vsub.f32 1.0, %v1450_v38 }
 0x3ae   : > { %v1452_v42 = vmul.f32 %v2036_v36, %v1451_v40  ;;  %v2038_v49 = vpop.eup %2037 }
 0x3b0   : > { %v1453_v44 = vadd.f32 %v2036_v36, %v1452_v42 }
 0x3b2   : > { %v1457_v46 = vsel %vm1456_vm15, %v2036_v36, %v1453_v44 }
 0x3b3   : > { %v1462_v47 = vsel %vm1459_vm0, %v1461_v45, %v1457_v46 }
 0x3b4   : > { %v1467_v48 = vsub.f32 1.0, %v1462_v47  ;;  %v1469_v51 = vmul.f32 %v1462_v47, %v2410_v20 }
 0x3b6   : > { %v1468_v50 = vmul.f32 %v2038_v49, %v1467_v48 }
 0x3b8   : > { %v1470_v52 = vadd.f32 %v1469_v51, %v1468_v50 }
 0x3ba   : > { %1475 = vadd.xlane.f32.xlu1 %v1470_v52  ;;  %1471 = vst [vmem:[#allocation2] sm:$0xff] %v1470_v52  ;;  %v1478_v53 = vmul.f32 %v1470_v52, %v1470_v52 }
 0x3bb   : > { %1472 = vst [vmem:[#allocation9] sm:$0xff] %v1470_v52 }
 0x3bc   : > { %1479 = vadd.xlane.f32.xlu2 %v1478_v53  ;;  %1980 = dma.vmem_to_hbm [thread:$0]  (%p1994_p8), %s1533_s24, 128, %s1535_s1, [#allocation6]  }
 0x42d   : > { %v1476_v54 = vpop.xlane.xlu1 %1475 }
 0x42e   : > { %v1477_v15 = vmul.f32 0.015625, %v1476_v54 }
 0x42f   : > { %v1480_v55 = vpop.xlane.xlu2 %1479 }
 0x430   : > { %v1482_v56 = vmul.f32 %v1477_v15, %v1477_v15  ;;  %v1481_v57 = vmul.f32 0.015625, %v1480_v55  ;;  %v1484_v1 = vsub.f32 %v1470_v52, %v1477_v15 }
 0x432   : > { %v1483_v58 = vsub.f32 %v1481_v57, %v1482_v56 }
 0x434   : > { %v1485_v59 = vadd.f32 1e-05, %v1483_v58 }
 0x436   : > { %2039 = vrsqrt.f32 %v1485_v59  ;;  %vm1492_vm2 = vweird.f32 %v1485_v59 }
 0x43c   : > { %v2040_v60 = vpop.eup %2039 }
 0x43d   : > { %v1487_v61 = vmul.f32 %v2040_v60, %v1485_v59  ;;  %vm1493_vm1 = vweird.f32 %v2040_v60 }
 0x43e   : > { %vm1494_vm3 = vmor %vm1492_vm2, %vm1493_vm1 }
 0x43f   : > { %v1488_v62 = vmul.f32 %v2040_v60, %v1487_v61 }
 0x441   : > { %v1489_v63 = vmul.f32 0.5, %v1488_v62 }
 0x443   : > { %v1490_v20 = vsub.f32 1.5, %v1489_v63 }
 0x445   : > { %v1491_v0 = vmul.f32 %v2040_v60, %v1490_v20 }
 0x447   : > { %v1495_v3 = vsel %vm1494_vm3, %v2040_v60, %v1491_v0 }
 0x448   : > { %v1496_v4 = vmul.f32 %v1495_v3, %v1484_v1 }
 0x44a   : > { %v1500_v6 = vmul.f32 %v2019_v2, %v1496_v4 }
 0x44c   : > { %v1504_v8 = vadd.f32 %v2020_v5, %v1500_v6 }
 0x44e   : > { %v1509_v9 = vmul.f32 %v2021_v7, %v1504_v8 }
 0x450   : > { %1510 = vadd.xlane.f32.xlu1 %v1509_v9 }
 0x4c3   : > { %v1511_v11 = vpop.xlane.xlu1 %1510 }
 0x4c4   : > { %v1516_v12 = vadd.f32 %v2022_v10, %v1511_v11 }
 0x4c6   : > { %1518 = vst.msk [vmem:[%s730_s27] sm:$0xff] %vm1517_vm4, %v1516_v12 }
 0x4c7   : > { %2142 = dma.done.wait (%p1994_p8), [#allocation6], 128  }
 0x4c8   : > { %2144 = vsyncadd (%p1994_p8), [#allocation6], 4294967168 }
 0x4c9 PF: > { %s38_s29 = sadd.s32 1, %s2147_s29  }
 0x4ca   : > { %p35_p9 = scmp.ge.s32.totalorder %s38_s29, 8  }
 0x4cc   :  { %37 = sbr.rel (!%p35_p9) target bundleno = 12 (0xc), region = 159 }
 0x4d1   :  { %1555 = vsyncpa [#allocation5], 1 }
 0x4d2   :  { %1557 = vsyncpa [#allocation5 + $0x1], 1 }
 0x4d3   :  { %1558 = vsyncpa [#allocation8], 1 }
 0x4d4   :  { %1559 = vsyncpa [#allocation6], 1 }
 0x4d5   :  { %1561 = vsyncpa [#allocation6 + $0x1], 1 }

</bundles_post_ra>
